<compile_context>
chip_gen: v6e
topology: v6e:2x2x1
jax: 0.10.0
libtpu: 0.0.40
codegen_flags: <defaults>
</compile_context>

<pallas_src>
import functools
import math

import jax
import jax.numpy as jnp
from jax.experimental import pallas as pl
from jax.experimental.pallas import tpu as pltpu


def _layer_norm(x, w, b, eps):
    mu = jnp.mean(x, axis=-1, keepdims=True)
    var = jnp.mean(jnp.square(x - mu), axis=-1, keepdims=True)
    return (x - mu) * jax.lax.rsqrt(var + eps) * w + b


def _gelu_tanh(x):
    # TODO(synk): torch nn.GELU() defaults to the exact erf form; Mosaic has no
    # erf lowering, so the tanh approximation is used (reference matches).
    c = math.sqrt(2.0 / math.pi)
    return 0.5 * x * (1.0 + jnp.tanh(c * (x + 0.044715 * x * x * x)))


def _block_kernel(x_ref,
                  ln1_w_ref, ln1_b_ref,
                  wq_ref, wk_ref, wv_ref,
                  wproj_ref, bproj_ref, gamma1_ref,
                  ln2_w_ref, ln2_b_ref,
                  wfc1_ref, bfc1_ref, wfc2_ref, bfc2_ref, gamma2_ref,
                  o_ref,
                  q_scr, k_scr, v_scr, attn_scr,
                  *, num_heads, eps, mlp_slab):
    bf16 = jnp.bfloat16
    x = x_ref[0].astype(jnp.float32)                       # (N, D) residual stream (f32)
    N, D = x.shape
    hd = D // num_heads
    scale = hd ** -0.5

    # ---------------- x + ls1(attn(norm1(x))) ----------------
    h = _layer_norm(x, ln1_w_ref[...], ln1_b_ref[...], eps).astype(bf16)

    # Lane-dense full-width QKV projections (MXU-friendly) into VMEM scratch.
    q_scr[...] = jnp.dot(h, wq_ref[...], preferred_element_type=jnp.float32).astype(bf16)
    k_scr[...] = jnp.dot(h, wk_ref[...], preferred_element_type=jnp.float32).astype(bf16)
    v_scr[...] = jnp.dot(h, wv_ref[...], preferred_element_type=jnp.float32).astype(bf16)

    # Per-head attention.  Head count is small & static; per-head slices are
    # STATIC column windows of the scratch refs, and each head's output goes
    # straight into a lane-dense (N, D) scratch ref, so no f32 accumulator
    # value stays live across the loop.
    # TODO(synk): could become lax.fori_loop once dynamic sub-128 lane slicing
    # lowers reliably; kept static to guarantee clean Mosaic lowering.
    for hh in range(num_heads):
        c0, c1 = hh * hd, (hh + 1) * hd
        qh = q_scr[:, c0:c1]                               # (N, hd) bf16
        kh = k_scr[:, c0:c1]
        vh = v_scr[:, c0:c1]
        s = jax.lax.dot_general(qh, kh, (((1,), (1,)), ((), ())),
                                preferred_element_type=jnp.float32) * scale
        s = s - jnp.max(s, axis=-1, keepdims=True)
        p = jnp.exp(s)
        inv = pl.reciprocal(jnp.sum(p, axis=-1, keepdims=True), approx=True)
        p = (p * inv).astype(bf16)                         # softmax; attn_drop = id
        attn_scr[:, c0:c1] = jnp.dot(
            p, vh, preferred_element_type=jnp.float32).astype(bf16)

    # One full-depth output projection; LayerScale fused into the residual add
    # (drop_path1 = identity).
    proj = jnp.dot(attn_scr[...], wproj_ref[...],
                   preferred_element_type=jnp.float32) + bproj_ref[...]
    x = x + gamma1_ref[...] * proj

    # ---------------- x + ls2(mlp(norm2(x))) ----------------
    h2 = _layer_norm(x, ln2_w_ref[...], ln2_b_ref[...], eps).astype(bf16)
    H = wfc1_ref.shape[1]
    mlp = jnp.zeros((N, D), jnp.float32)
    for s0 in range(0, H, mlp_slab):                       # static slab loop over H
        s1 = s0 + mlp_slab
        f = jnp.dot(h2, wfc1_ref[:, s0:s1],
                    preferred_element_type=jnp.float32) + bfc1_ref[:, s0:s1]
        f = _gelu_tanh(f).astype(bf16)                     # drop1 = identity
        mlp = mlp + jnp.dot(f, wfc2_ref[s0:s1, :],
                            preferred_element_type=jnp.float32)
    x = x + gamma2_ref[...] * (mlp + bfc2_ref[...])        # drop2/drop_path2 = id

    o_ref[0] = x.astype(o_ref.dtype)


def prepare_params(params):
    """One-time parameter prep (hoisted off the per-call path).

    Matmul weights -> bf16; 1-D params -> (1, d) f32 rows; qkv split into
    lane-dense Wq/Wk/Wv (column ordering already matches torch's
    reshape(B, N, 3, heads, hd))."""
    f32, bf16 = jnp.float32, jnp.bfloat16
    D = params["qkv_w"].shape[0]

    def row(a):
        return a.reshape(1, -1).astype(f32)

    qkv_w = params["qkv_w"]
    return dict(
        ln1_w=row(params["ln1_w"]), ln1_b=row(params["ln1_b"]),
        wq=qkv_w[:, 0 * D:1 * D].astype(bf16),
        wk=qkv_w[:, 1 * D:2 * D].astype(bf16),
        wv=qkv_w[:, 2 * D:3 * D].astype(bf16),
        wproj=params["proj_w"].astype(bf16), bproj=row(params["proj_b"]),
        gamma1=row(params["gamma1"]),
        ln2_w=row(params["ln2_w"]), ln2_b=row(params["ln2_b"]),
        wfc1=params["fc1_w"].astype(bf16), bfc1=row(params["fc1_b"]),
        wfc2=params["fc2_w"].astype(bf16), bfc2=row(params["fc2_b"]),
        gamma2=row(params["gamma2"]),
    )


def vit_block(x, prep, *, num_heads, eps=1e-5):
    """Forward of the PyTorch Block (eval mode). x: (B, N, D); prep from prepare_params."""
    B, N, D = x.shape
    assert D % num_heads == 0, "dim should be divisible by num_heads"
    H = prep["wfc1"].shape[1]
    # MLP slab width: lane-multiple slab when H allows, else the full H.
    mlp_slab = 512 if (H % 512 == 0) else H

    names = ["ln1_w", "ln1_b", "wq", "wk", "wv", "wproj", "bproj", "gamma1",
             "ln2_w", "ln2_b", "wfc1", "bfc1", "wfc2", "bfc2", "gamma2"]
    weights = [prep[n] for n in names]
    ins = [x] + weights

    # Weights use a constant index_map -> DMA'd once and kept resident across
    # the batch grid.  TODO(synk): on v7x (64 MiB VMEM) single-buffer these
    # grid-invariant specs (pipeline_mode=pl.Buffered(1)) and/or stream fc1/fc2
    # over H with an inner pltpu.emit_pipeline; bf16 weights already halve the
    # footprint so the portable default is kept here.
    # TODO(synk): for B=1 inference on v7x add a second "parallel" grid axis
    # over query tiles (tq=128/256) so both TensorCores get work.
    in_specs = [pl.BlockSpec((1, N, D), lambda b: (b, 0, 0))] + [
        pl.BlockSpec(tuple(w.shape), lambda b, _n=w.ndim: (0,) * _n)
        for w in weights
    ]

    try:
        vmem_cap = int(pltpu.get_tpu_info().vmem_capacity_bytes)
        vmem_limit = min(64 * 1024 * 1024, (vmem_cap * 3) // 4)
    except Exception:  # noqa: BLE001 - fall back to a safe static limit
        vmem_limit = 48 * 1024 * 1024

    flops = 2 * B * N * (4 * D * D + 2 * N * D + 2 * D * H)
    transcendentals = B * num_heads * N * N + B * N * H
    bytes_accessed = 2 * x.size * x.dtype.itemsize + sum(
        int(w.size) * w.dtype.itemsize for w in weights)

    return pl.pallas_call(
        functools.partial(_block_kernel, num_heads=num_heads, eps=eps,
                          mlp_slab=mlp_slab),
        out_shape=jax.ShapeDtypeStruct((B, N, D), x.dtype),
        grid_spec=pltpu.PrefetchScalarGridSpec(
            num_scalar_prefetch=0,
            grid=(B,),
            in_specs=in_specs,
            out_specs=pl.BlockSpec((1, N, D), lambda b: (b, 0, 0)),
            scratch_shapes=[
                pltpu.VMEM((N, D), jnp.bfloat16),   # q
                pltpu.VMEM((N, D), jnp.bfloat16),   # k
                pltpu.VMEM((N, D), jnp.bfloat16),   # v
                pltpu.VMEM((N, D), jnp.bfloat16),   # concatenated per-head outputs
            ],
        ),
        compiler_params=pltpu.CompilerParams(
            dimension_semantics=("parallel",),       # batch steps split over TCs
            vmem_limit_bytes=int(vmem_limit),
        ),
        cost_estimate=pl.CostEstimate(
            flops=int(flops),
            transcendentals=int(transcendentals),
            bytes_accessed=int(bytes_accessed),
        ),
    )(*ins)


def ref_block(x, params, *, num_heads, eps=1e-5):
    """Plain-JAX reference with the same mixed-precision recipe (eval mode)."""
    B, N, D = x.shape
    hd = D // num_heads
    bf16 = jnp.bfloat16

    def ln(v, w, b):
        mu = jnp.mean(v, -1, keepdims=True)
        var = jnp.mean(jnp.square(v - mu), -1, keepdims=True)
        return (v - mu) * jax.lax.rsqrt(var + eps) * w + b

    h = ln(x, params["ln1_w"], params["ln1_b"]).astype(bf16)
    qkv = jnp.einsum("bnd,de->bne", h, params["qkv_w"].astype(bf16),
                     preferred_element_type=jnp.float32)
    qkv = qkv.astype(bf16).reshape(B, N, 3, num_heads, hd)     # qkv_bias=False
    q = jnp.swapaxes(qkv[:, :, 0], 1, 2)                       # (B, h, N, hd)
    k = jnp.swapaxes(qkv[:, :, 1], 1, 2)
    v = jnp.swapaxes(qkv[:, :, 2], 1, 2)
    s = jnp.einsum("bhqd,bhkd->bhqk", q, k,
                   preferred_element_type=jnp.float32) * hd ** -0.5
    s = s - jnp.max(s, -1, keepdims=True)
    p = jnp.exp(s)
    p = (p / jnp.sum(p, -1, keepdims=True)).astype(bf16)
    out = jnp.einsum("bhqk,bhkd->bhqd", p, v,
                     preferred_element_type=jnp.float32)
    out = jnp.swapaxes(out, 1, 2).reshape(B, N, D).astype(bf16)
    proj = jnp.einsum("bnd,de->bne", out, params["proj_w"].astype(bf16),
                      preferred_element_type=jnp.float32) + params["proj_b"]
    x = x + params["gamma1"] * proj

    h2 = ln(x, params["ln2_w"], params["ln2_b"]).astype(bf16)
    f = jnp.einsum("bnd,dh->bnh", h2, params["fc1_w"].astype(bf16),
                   preferred_element_type=jnp.float32) + params["fc1_b"]
    f = _gelu_tanh(f).astype(bf16)
    f = jnp.einsum("bnh,hd->bnd", f, params["fc2_w"].astype(bf16),
                   preferred_element_type=jnp.float32) + params["fc2_b"]
    return x + params["gamma2"] * f


if __name__ == "__main__":
    B, N, D = 2, 8, 32           # batch=2, seq=8, hidden=32 (toy correctness shapes)
    num_heads = 4
    H = 4 * D                    # mlp_ratio = 4.0
    init_values = 1.0            # LayerScale enabled; O(1) so the branch math is
                                 # actually exercised by the tolerance check
    eps = 1e-5

    key = jax.random.PRNGKey(0)
    ks = jax.random.split(key, 8)
    x = jax.random.normal(ks[0], (B, N, D), dtype=jnp.float32)

    params = dict(
        ln1_w=jnp.ones((D,), jnp.float32),
        ln1_b=jnp.zeros((D,), jnp.float32),
        qkv_w=jax.random.normal(ks[1], (D, 3 * D), jnp.float32) * D ** -0.5,
        proj_w=jax.random.normal(ks[2], (D, D), jnp.float32) * D ** -0.5,
        proj_b=0.02 * jax.random.normal(ks[3], (D,), jnp.float32),
        gamma1=init_values * jnp.ones((D,), jnp.float32),
        ln2_w=jnp.ones((D,), jnp.float32),
        ln2_b=jnp.zeros((D,), jnp.float32),
        fc1_w=jax.random.normal(ks[4], (D, H), jnp.float32) * D ** -0.5,
        fc1_b=0.02 * jax.random.normal(ks[5], (H,), jnp.float32),
        fc2_w=jax.random.normal(ks[6], (H, D), jnp.float32) * H ** -0.5,
        fc2_b=0.02 * jax.random.normal(ks[7], (D,), jnp.float32),
        gamma2=init_values * jnp.ones((D,), jnp.float32),
    )

    prep = prepare_params(params)    # one-time weight prep, hoisted off the call path
    y = jax.block_until_ready(vit_block(x, prep, num_heads=num_heads, eps=eps))
    y_ref = ref_block(x, params, num_heads=num_heads, eps=eps)

    err = float(jnp.max(jnp.abs(y - y_ref)))
    # bf16 matmul operands + approximate softmax reciprocal -> percent-level tolerance.
    assert jnp.allclose(y, y_ref, atol=2e-2, rtol=2e-2), f"mismatch: max abs err {err}"
    print("KERNEL_OK")
</pallas_src>

<mosaic_0001>
module attributes {stable_mosaic.version = 11 : i64} {
  func.func @_block_kernel(%arg0: i32, %arg1: memref<1x8x32xf32, #tpu.memory_space<vmem>>, %arg2: memref<1x32xf32, #tpu.memory_space<vmem>>, %arg3: memref<1x32xf32, #tpu.memory_space<vmem>>, %arg4: memref<32x32xbf16, #tpu.memory_space<vmem>>, %arg5: memref<32x32xbf16, #tpu.memory_space<vmem>>, %arg6: memref<32x32xbf16, #tpu.memory_space<vmem>>, %arg7: memref<32x32xbf16, #tpu.memory_space<vmem>>, %arg8: memref<1x32xf32, #tpu.memory_space<vmem>>, %arg9: memref<1x32xf32, #tpu.memory_space<vmem>>, %arg10: memref<1x32xf32, #tpu.memory_space<vmem>>, %arg11: memref<1x32xf32, #tpu.memory_space<vmem>>, %arg12: memref<32x128xbf16, #tpu.memory_space<vmem>>, %arg13: memref<1x128xf32, #tpu.memory_space<vmem>>, %arg14: memref<128x32xbf16, #tpu.memory_space<vmem>>, %arg15: memref<1x32xf32, #tpu.memory_space<vmem>>, %arg16: memref<1x32xf32, #tpu.memory_space<vmem>>, %arg17: memref<1x8x32xf32, #tpu.memory_space<vmem>>, %arg18: memref<8x32xbf16, #tpu.memory_space<vmem>>, %arg19: memref<8x32xbf16, #tpu.memory_space<vmem>>, %arg20: memref<8x32xbf16, #tpu.memory_space<vmem>>, %arg21: memref<8x32xbf16, #tpu.memory_space<vmem>>) attributes {dimension_semantics = [#tpu.dimension_semantics<parallel>], iteration_bounds = array<i64: 2>, scalar_prefetch = 0 : i64, scratch_operands = 4 : i64, tpu.core_type = #tpu.core_type<tc>, window_params = [{transform_indices = @transform_0, window_bounds = array<i64: 1, 8, 32>}, {pipeline_mode = #tpu.pipeline_mode<synchronous>, transform_indices = @transform_1, window_bounds = array<i64: 1, 32>}, {pipeline_mode = #tpu.pipeline_mode<synchronous>, transform_indices = @transform_2, window_bounds = array<i64: 1, 32>}, {pipeline_mode = #tpu.pipeline_mode<synchronous>, transform_indices = @transform_3, window_bounds = array<i64: 32, 32>}, {pipeline_mode = #tpu.pipeline_mode<synchronous>, transform_indices = @transform_4, window_bounds = array<i64: 32, 32>}, {pipeline_mode = #tpu.pipeline_mode<synchronous>, transform_indices = @transform_5, window_bounds = array<i64: 32, 32>}, {pipeline_mode = #tpu.pipeline_mode<synchronous>, transform_indices = @transform_6, window_bounds = array<i64: 32, 32>}, {pipeline_mode = #tpu.pipeline_mode<synchronous>, transform_indices = @transform_7, window_bounds = array<i64: 1, 32>}, {pipeline_mode = #tpu.pipeline_mode<synchronous>, transform_indices = @transform_8, window_bounds = array<i64: 1, 32>}, {pipeline_mode = #tpu.pipeline_mode<synchronous>, transform_indices = @transform_9, window_bounds = array<i64: 1, 32>}, {pipeline_mode = #tpu.pipeline_mode<synchronous>, transform_indices = @transform_10, window_bounds = array<i64: 1, 32>}, {pipeline_mode = #tpu.pipeline_mode<synchronous>, transform_indices = @transform_11, window_bounds = array<i64: 32, 128>}, {pipeline_mode = #tpu.pipeline_mode<synchronous>, transform_indices = @transform_12, window_bounds = array<i64: 1, 128>}, {pipeline_mode = #tpu.pipeline_mode<synchronous>, transform_indices = @transform_13, window_bounds = array<i64: 128, 32>}, {pipeline_mode = #tpu.pipeline_mode<synchronous>, transform_indices = @transform_14, window_bounds = array<i64: 1, 32>}, {pipeline_mode = #tpu.pipeline_mode<synchronous>, transform_indices = @transform_15, window_bounds = array<i64: 1, 32>}, {transform_indices = @transform_16, window_bounds = array<i64: 1, 8, 32>}]} {
    %c0 = arith.constant 0 : index
    %c0_0 = arith.constant 0 : index
    %c0_1 = arith.constant 0 : index
    %0 = vector.load %arg1[%c0, %c0_0, %c0_1] : memref<1x8x32xf32, #tpu.memory_space<vmem>>, vector<1x8x32xf32>
    %1 = vector.shape_cast %0 : vector<1x8x32xf32> to vector<8x32xf32>
    %c0_2 = arith.constant 0 : index
    %c0_3 = arith.constant 0 : index
    %2 = vector.load %arg2[%c0_2, %c0_3] : memref<1x32xf32, #tpu.memory_space<vmem>>, vector<1x32xf32>
    %c0_4 = arith.constant 0 : index
    %c0_5 = arith.constant 0 : index
    %3 = vector.load %arg3[%c0_4, %c0_5] : memref<1x32xf32, #tpu.memory_space<vmem>>, vector<1x32xf32>
    %cst = arith.constant dense<0.000000e+00> : vector<8xf32>
    %4 = vector.multi_reduction <add>, %1, %cst [1] : vector<8x32xf32> to vector<8xf32>
    %5 = vector.shape_cast %4 : vector<8xf32> to vector<8x1xf32>
    %cst_6 = arith.constant 3.200000e+01 : f32
    %6 = vector.broadcast %cst_6 : f32 to vector<8x1xf32>
    %7 = arith.divf %5, %6 : vector<8x1xf32>
    %8 = vector.broadcast %7 : vector<8x1xf32> to vector<8x32xf32>
    %9 = arith.subf %1, %8 : vector<8x32xf32>
    %10 = arith.mulf %9, %9 : vector<8x32xf32>
    %cst_7 = arith.constant dense<0.000000e+00> : vector<8xf32>
    %11 = vector.multi_reduction <add>, %10, %cst_7 [1] : vector<8x32xf32> to vector<8xf32>
    %12 = vector.shape_cast %11 : vector<8xf32> to vector<8x1xf32>
    %cst_8 = arith.constant 3.200000e+01 : f32
    %13 = vector.broadcast %cst_8 : f32 to vector<8x1xf32>
    %14 = arith.divf %12, %13 : vector<8x1xf32>
    %15 = vector.broadcast %7 : vector<8x1xf32> to vector<8x32xf32>
    %16 = arith.subf %1, %15 : vector<8x32xf32>
    %cst_9 = arith.constant 9.99999974E-6 : f32
    %17 = vector.broadcast %cst_9 : f32 to vector<8x1xf32>
    %18 = arith.addf %14, %17 : vector<8x1xf32>
    %19 = math.rsqrt %18 : vector<8x1xf32>
    %20 = vector.broadcast %19 : vector<8x1xf32> to vector<8x32xf32>
    %21 = arith.mulf %16, %20 : vector<8x32xf32>
    %22 = vector.broadcast %2 : vector<1x32xf32> to vector<8x32xf32>
    %23 = arith.mulf %21, %22 : vector<8x32xf32>
    %24 = vector.broadcast %3 : vector<1x32xf32> to vector<8x32xf32>
    %25 = arith.addf %23, %24 : vector<8x32xf32>
    %26 = arith.truncf %25 : vector<8x32xf32> to vector<8x32xbf16>
    %c0_10 = arith.constant 0 : index
    %c0_11 = arith.constant 0 : index
    %27 = vector.load %arg4[%c0_10, %c0_11] : memref<32x32xbf16, #tpu.memory_space<vmem>>, vector<32x32xbf16>
    %cst_12 = arith.constant dense<0.000000e+00> : vector<8x32xf32>
    %28 = tpu.matmul %26, %27, %cst_12 {dimension_numbers = #tpu.dot_dimension_numbers<[1], [0], [0], [1], [0, 0, 1, 1], [], []>} : vector<8x32xbf16>, vector<32x32xbf16>, vector<8x32xf32> -> vector<8x32xf32>
    %29 = arith.truncf %28 : vector<8x32xf32> to vector<8x32xbf16>
    %c0_13 = arith.constant 0 : index
    %c0_14 = arith.constant 0 : index
    %30 = vector.load %arg18[%c0_13, %c0_14] : memref<8x32xbf16, #tpu.memory_space<vmem>>, vector<8x32xbf16>
    tpu.vector_store %arg18[%c0_13, %c0_14], %29 {strides = array<i32>} : memref<8x32xbf16, #tpu.memory_space<vmem>>, vector<8x32xbf16>,
    %c0_15 = arith.constant 0 : index
    %c0_16 = arith.constant 0 : index
    %31 = vector.load %arg5[%c0_15, %c0_16] : memref<32x32xbf16, #tpu.memory_space<vmem>>, vector<32x32xbf16>
    %cst_17 = arith.constant dense<0.000000e+00> : vector<8x32xf32>
    %32 = tpu.matmul %26, %31, %cst_17 {dimension_numbers = #tpu.dot_dimension_numbers<[1], [0], [0], [1], [0, 0, 1, 1], [], []>} : vector<8x32xbf16>, vector<32x32xbf16>, vector<8x32xf32> -> vector<8x32xf32>
    %33 = arith.truncf %32 : vector<8x32xf32> to vector<8x32xbf16>
    %c0_18 = arith.constant 0 : index
    %c0_19 = arith.constant 0 : index
    %34 = vector.load %arg19[%c0_18, %c0_19] : memref<8x32xbf16, #tpu.memory_space<vmem>>, vector<8x32xbf16>
    tpu.vector_store %arg19[%c0_18, %c0_19], %33 {strides = array<i32>} : memref<8x32xbf16, #tpu.memory_space<vmem>>, vector<8x32xbf16>,
    %c0_20 = arith.constant 0 : index
    %c0_21 = arith.constant 0 : index
    %35 = vector.load %arg6[%c0_20, %c0_21] : memref<32x32xbf16, #tpu.memory_space<vmem>>, vector<32x32xbf16>
    %cst_22 = arith.constant dense<0.000000e+00> : vector<8x32xf32>
    %36 = tpu.matmul %26, %35, %cst_22 {dimension_numbers = #tpu.dot_dimension_numbers<[1], [0], [0], [1], [0, 0, 1, 1], [], []>} : vector<8x32xbf16>, vector<32x32xbf16>, vector<8x32xf32> -> vector<8x32xf32>
    %37 = arith.truncf %36 : vector<8x32xf32> to vector<8x32xbf16>
    %c0_23 = arith.constant 0 : index
    %c0_24 = arith.constant 0 : index
    %38 = vector.load %arg20[%c0_23, %c0_24] : memref<8x32xbf16, #tpu.memory_space<vmem>>, vector<8x32xbf16>
    tpu.vector_store %arg20[%c0_23, %c0_24], %37 {strides = array<i32>} : memref<8x32xbf16, #tpu.memory_space<vmem>>, vector<8x32xbf16>,
    %c0_25 = arith.constant 0 : index
    %c0_26 = arith.constant 0 : index
    %39 = vector.load %arg18[%c0_25, %c0_26] : memref<8x32xbf16, #tpu.memory_space<vmem>>, vector<8x8xbf16>
    %c0_27 = arith.constant 0 : index
    %c0_28 = arith.constant 0 : index
    %40 = vector.load %arg19[%c0_27, %c0_28] : memref<8x32xbf16, #tpu.memory_space<vmem>>, vector<8x8xbf16>
    %c0_29 = arith.constant 0 : index
    %c0_30 = arith.constant 0 : index
    %41 = vector.load %arg20[%c0_29, %c0_30] : memref<8x32xbf16, #tpu.memory_space<vmem>>, vector<8x8xbf16>
    %cst_31 = arith.constant dense<0.000000e+00> : vector<8x8xf32>
    %42 = tpu.matmul %39, %40, %cst_31 {dimension_numbers = #tpu.dot_dimension_numbers<[1], [1], [0], [0], [0, 0, 1, 0], [], []>} : vector<8x8xbf16>, vector<8x8xbf16>, vector<8x8xf32> -> vector<8x8xf32>
    %cst_32 = arith.constant 0.353553385 : f32
    %43 = vector.broadcast %cst_32 : f32 to vector<8x8xf32>
    %44 = arith.mulf %42, %43 : vector<8x8xf32>
    %cst_33 = arith.constant dense<0xFF800000> : vector<8xf32>
    %45 = vector.multi_reduction <maximumf>, %44, %cst_33 [1] : vector<8x8xf32> to vector<8xf32>
    %46 = vector.shape_cast %45 : vector<8xf32> to vector<8x1xf32>
    %47 = vector.broadcast %46 : vector<8x1xf32> to vector<8x8xf32>
    %48 = arith.subf %44, %47 : vector<8x8xf32>
    %49 = math.exp %48 : vector<8x8xf32>
    %cst_34 = arith.constant dense<0.000000e+00> : vector<8xf32>
    %50 = vector.multi_reduction <add>, %49, %cst_34 [1] : vector<8x8xf32> to vector<8xf32>
    %51 = vector.shape_cast %50 : vector<8xf32> to vector<8x1xf32>
    %52 = tpu.reciprocal %51 {approx = true} : vector<8x1xf32> -> vector<8x1xf32>
    %53 = vector.broadcast %52 : vector<8x1xf32> to vector<8x8xf32>
    %54 = arith.mulf %49, %53 : vector<8x8xf32>
    %55 = arith.truncf %54 : vector<8x8xf32> to vector<8x8xbf16>
    %cst_35 = arith.constant dense<0.000000e+00> : vector<8x8xf32>
    %56 = tpu.matmul %55, %41, %cst_35 {dimension_numbers = #tpu.dot_dimension_numbers<[1], [0], [0], [1], [0, 0, 1, 1], [], []>} : vector<8x8xbf16>, vector<8x8xbf16>, vector<8x8xf32> -> vector<8x8xf32>
    %57 = arith.truncf %56 : vector<8x8xf32> to vector<8x8xbf16>
    %c0_36 = arith.constant 0 : index
    %c0_37 = arith.constant 0 : index
    %58 = vector.load %arg21[%c0_36, %c0_37] : memref<8x32xbf16, #tpu.memory_space<vmem>>, vector<8x8xbf16>
    tpu.vector_store %arg21[%c0_36, %c0_37], %57 {strides = array<i32>} : memref<8x32xbf16, #tpu.memory_space<vmem>>, vector<8x8xbf16>,
    %c0_38 = arith.constant 0 : index
    %c8 = arith.constant 8 : index
    %59 = vector.load %arg18[%c0_38, %c8] : memref<8x32xbf16, #tpu.memory_space<vmem>>, vector<8x8xbf16>
    %c0_39 = arith.constant 0 : index
    %c8_40 = arith.constant 8 : index
    %60 = vector.load %arg19[%c0_39, %c8_40] : memref<8x32xbf16, #tpu.memory_space<vmem>>, vector<8x8xbf16>
    %c0_41 = arith.constant 0 : index
    %c8_42 = arith.constant 8 : index
    %61 = vector.load %arg20[%c0_41, %c8_42] : memref<8x32xbf16, #tpu.memory_space<vmem>>, vector<8x8xbf16>
    %cst_43 = arith.constant dense<0.000000e+00> : vector<8x8xf32>
    %62 = tpu.matmul %59, %60, %cst_43 {dimension_numbers = #tpu.dot_dimension_numbers<[1], [1], [0], [0], [0, 0, 1, 0], [], []>} : vector<8x8xbf16>, vector<8x8xbf16>, vector<8x8xf32> -> vector<8x8xf32>
    %cst_44 = arith.constant 0.353553385 : f32
    %63 = vector.broadcast %cst_44 : f32 to vector<8x8xf32>
    %64 = arith.mulf %62, %63 : vector<8x8xf32>
    %cst_45 = arith.constant dense<0xFF800000> : vector<8xf32>
    %65 = vector.multi_reduction <maximumf>, %64, %cst_45 [1] : vector<8x8xf32> to vector<8xf32>
    %66 = vector.shape_cast %65 : vector<8xf32> to vector<8x1xf32>
    %67 = vector.broadcast %66 : vector<8x1xf32> to vector<8x8xf32>
    %68 = arith.subf %64, %67 : vector<8x8xf32>
    %69 = math.exp %68 : vector<8x8xf32>
    %cst_46 = arith.constant dense<0.000000e+00> : vector<8xf32>
    %70 = vector.multi_reduction <add>, %69, %cst_46 [1] : vector<8x8xf32> to vector<8xf32>
    %71 = vector.shape_cast %70 : vector<8xf32> to vector<8x1xf32>
    %72 = tpu.reciprocal %71 {approx = true} : vector<8x1xf32> -> vector<8x1xf32>
    %73 = vector.broadcast %72 : vector<8x1xf32> to vector<8x8xf32>
    %74 = arith.mulf %69, %73 : vector<8x8xf32>
    %75 = arith.truncf %74 : vector<8x8xf32> to vector<8x8xbf16>
    %cst_47 = arith.constant dense<0.000000e+00> : vector<8x8xf32>
    %76 = tpu.matmul %75, %61, %cst_47 {dimension_numbers = #tpu.dot_dimension_numbers<[1], [0], [0], [1], [0, 0, 1, 1], [], []>} : vector<8x8xbf16>, vector<8x8xbf16>, vector<8x8xf32> -> vector<8x8xf32>
    %77 = arith.truncf %76 : vector<8x8xf32> to vector<8x8xbf16>
    %c0_48 = arith.constant 0 : index
    %c8_49 = arith.constant 8 : index
    %78 = vector.load %arg21[%c0_48, %c8_49] : memref<8x32xbf16, #tpu.memory_space<vmem>>, vector<8x8xbf16>
    tpu.vector_store %arg21[%c0_48, %c8_49], %77 {strides = array<i32>} : memref<8x32xbf16, #tpu.memory_space<vmem>>, vector<8x8xbf16>,
    %c0_50 = arith.constant 0 : index
    %c16 = arith.constant 16 : index
    %79 = vector.load %arg18[%c0_50, %c16] : memref<8x32xbf16, #tpu.memory_space<vmem>>, vector<8x8xbf16>
    %c0_51 = arith.constant 0 : index
    %c16_52 = arith.constant 16 : index
    %80 = vector.load %arg19[%c0_51, %c16_52] : memref<8x32xbf16, #tpu.memory_space<vmem>>, vector<8x8xbf16>
    %c0_53 = arith.constant 0 : index
    %c16_54 = arith.constant 16 : index
    %81 = vector.load %arg20[%c0_53, %c16_54] : memref<8x32xbf16, #tpu.memory_space<vmem>>, vector<8x8xbf16>
    %cst_55 = arith.constant dense<0.000000e+00> : vector<8x8xf32>
    %82 = tpu.matmul %79, %80, %cst_55 {dimension_numbers = #tpu.dot_dimension_numbers<[1], [1], [0], [0], [0, 0, 1, 0], [], []>} : vector<8x8xbf16>, vector<8x8xbf16>, vector<8x8xf32> -> vector<8x8xf32>
    %cst_56 = arith.constant 0.353553385 : f32
    %83 = vector.broadcast %cst_56 : f32 to vector<8x8xf32>
    %84 = arith.mulf %82, %83 : vector<8x8xf32>
    %cst_57 = arith.constant dense<0xFF800000> : vector<8xf32>
    %85 = vector.multi_reduction <maximumf>, %84, %cst_57 [1] : vector<8x8xf32> to vector<8xf32>
    %86 = vector.shape_cast %85 : vector<8xf32> to vector<8x1xf32>
    %87 = vector.broadcast %86 : vector<8x1xf32> to vector<8x8xf32>
    %88 = arith.subf %84, %87 : vector<8x8xf32>
    %89 = math.exp %88 : vector<8x8xf32>
    %cst_58 = arith.constant dense<0.000000e+00> : vector<8xf32>
    %90 = vector.multi_reduction <add>, %89, %cst_58 [1] : vector<8x8xf32> to vector<8xf32>
    %91 = vector.shape_cast %90 : vector<8xf32> to vector<8x1xf32>
    %92 = tpu.reciprocal %91 {approx = true} : vector<8x1xf32> -> vector<8x1xf32>
    %93 = vector.broadcast %92 : vector<8x1xf32> to vector<8x8xf32>
    %94 = arith.mulf %89, %93 : vector<8x8xf32>
    %95 = arith.truncf %94 : vector<8x8xf32> to vector<8x8xbf16>
    %cst_59 = arith.constant dense<0.000000e+00> : vector<8x8xf32>
    %96 = tpu.matmul %95, %81, %cst_59 {dimension_numbers = #tpu.dot_dimension_numbers<[1], [0], [0], [1], [0, 0, 1, 1], [], []>} : vector<8x8xbf16>, vector<8x8xbf16>, vector<8x8xf32> -> vector<8x8xf32>
    %97 = arith.truncf %96 : vector<8x8xf32> to vector<8x8xbf16>
    %c0_60 = arith.constant 0 : index
    %c16_61 = arith.constant 16 : index
    %98 = vector.load %arg21[%c0_60, %c16_61] : memref<8x32xbf16, #tpu.memory_space<vmem>>, vector<8x8xbf16>
    tpu.vector_store %arg21[%c0_60, %c16_61], %97 {strides = array<i32>} : memref<8x32xbf16, #tpu.memory_space<vmem>>, vector<8x8xbf16>,
    %c0_62 = arith.constant 0 : index
    %c24 = arith.constant 24 : index
    %99 = vector.load %arg18[%c0_62, %c24] : memref<8x32xbf16, #tpu.memory_space<vmem>>, vector<8x8xbf16>
    %c0_63 = arith.constant 0 : index
    %c24_64 = arith.constant 24 : index
    %100 = vector.load %arg19[%c0_63, %c24_64] : memref<8x32xbf16, #tpu.memory_space<vmem>>, vector<8x8xbf16>
    %c0_65 = arith.constant 0 : index
    %c24_66 = arith.constant 24 : index
    %101 = vector.load %arg20[%c0_65, %c24_66] : memref<8x32xbf16, #tpu.memory_space<vmem>>, vector<8x8xbf16>
    %cst_67 = arith.constant dense<0.000000e+00> : vector<8x8xf32>
    %102 = tpu.matmul %99, %100, %cst_67 {dimension_numbers = #tpu.dot_dimension_numbers<[1], [1], [0], [0], [0, 0, 1, 0], [], []>} : vector<8x8xbf16>, vector<8x8xbf16>, vector<8x8xf32> -> vector<8x8xf32>
    %cst_68 = arith.constant 0.353553385 : f32
    %103 = vector.broadcast %cst_68 : f32 to vector<8x8xf32>
    %104 = arith.mulf %102, %103 : vector<8x8xf32>
    %cst_69 = arith.constant dense<0xFF800000> : vector<8xf32>
    %105 = vector.multi_reduction <maximumf>, %104, %cst_69 [1] : vector<8x8xf32> to vector<8xf32>
    %106 = vector.shape_cast %105 : vector<8xf32> to vector<8x1xf32>
    %107 = vector.broadcast %106 : vector<8x1xf32> to vector<8x8xf32>
    %108 = arith.subf %104, %107 : vector<8x8xf32>
    %109 = math.exp %108 : vector<8x8xf32>
    %cst_70 = arith.constant dense<0.000000e+00> : vector<8xf32>
    %110 = vector.multi_reduction <add>, %109, %cst_70 [1] : vector<8x8xf32> to vector<8xf32>
    %111 = vector.shape_cast %110 : vector<8xf32> to vector<8x1xf32>
    %112 = tpu.reciprocal %111 {approx = true} : vector<8x1xf32> -> vector<8x1xf32>
    %113 = vector.broadcast %112 : vector<8x1xf32> to vector<8x8xf32>
    %114 = arith.mulf %109, %113 : vector<8x8xf32>
    %115 = arith.truncf %114 : vector<8x8xf32> to vector<8x8xbf16>
    %cst_71 = arith.constant dense<0.000000e+00> : vector<8x8xf32>
    %116 = tpu.matmul %115, %101, %cst_71 {dimension_numbers = #tpu.dot_dimension_numbers<[1], [0], [0], [1], [0, 0, 1, 1], [], []>} : vector<8x8xbf16>, vector<8x8xbf16>, vector<8x8xf32> -> vector<8x8xf32>
    %117 = arith.truncf %116 : vector<8x8xf32> to vector<8x8xbf16>
    %c0_72 = arith.constant 0 : index
    %c24_73 = arith.constant 24 : index
    %118 = vector.load %arg21[%c0_72, %c24_73] : memref<8x32xbf16, #tpu.memory_space<vmem>>, vector<8x8xbf16>
    tpu.vector_store %arg21[%c0_72, %c24_73], %117 {strides = array<i32>} : memref<8x32xbf16, #tpu.memory_space<vmem>>, vector<8x8xbf16>,
    %c0_74 = arith.constant 0 : index
    %c0_75 = arith.constant 0 : index
    %119 = vector.load %arg21[%c0_74, %c0_75] : memref<8x32xbf16, #tpu.memory_space<vmem>>, vector<8x32xbf16>
    %c0_76 = arith.constant 0 : index
    %c0_77 = arith.constant 0 : index
    %120 = vector.load %arg7[%c0_76, %c0_77] : memref<32x32xbf16, #tpu.memory_space<vmem>>, vector<32x32xbf16>
    %cst_78 = arith.constant dense<0.000000e+00> : vector<8x32xf32>
    %121 = tpu.matmul %119, %120, %cst_78 {dimension_numbers = #tpu.dot_dimension_numbers<[1], [0], [0], [1], [0, 0, 1, 1], [], []>} : vector<8x32xbf16>, vector<32x32xbf16>, vector<8x32xf32> -> vector<8x32xf32>
    %c0_79 = arith.constant 0 : index
    %c0_80 = arith.constant 0 : index
    %122 = vector.load %arg8[%c0_79, %c0_80] : memref<1x32xf32, #tpu.memory_space<vmem>>, vector<1x32xf32>
    %123 = vector.broadcast %122 : vector<1x32xf32> to vector<8x32xf32>
    %124 = arith.addf %121, %123 : vector<8x32xf32>
    %c0_81 = arith.constant 0 : index
    %c0_82 = arith.constant 0 : index
    %125 = vector.load %arg9[%c0_81, %c0_82] : memref<1x32xf32, #tpu.memory_space<vmem>>, vector<1x32xf32>
    %126 = vector.broadcast %125 : vector<1x32xf32> to vector<8x32xf32>
    %127 = arith.mulf %126, %124 : vector<8x32xf32>
    %128 = arith.addf %1, %127 : vector<8x32xf32>
    %c0_83 = arith.constant 0 : index
    %c0_84 = arith.constant 0 : index
    %129 = vector.load %arg10[%c0_83, %c0_84] : memref<1x32xf32, #tpu.memory_space<vmem>>, vector<1x32xf32>
    %c0_85 = arith.constant 0 : index
    %c0_86 = arith.constant 0 : index
    %130 = vector.load %arg11[%c0_85, %c0_86] : memref<1x32xf32, #tpu.memory_space<vmem>>, vector<1x32xf32>
    %cst_87 = arith.constant dense<0.000000e+00> : vector<8xf32>
    %131 = vector.multi_reduction <add>, %128, %cst_87 [1] : vector<8x32xf32> to vector<8xf32>
    %132 = vector.shape_cast %131 : vector<8xf32> to vector<8x1xf32>
    %cst_88 = arith.constant 3.200000e+01 : f32
    %133 = vector.broadcast %cst_88 : f32 to vector<8x1xf32>
    %134 = arith.divf %132, %133 : vector<8x1xf32>
    %135 = vector.broadcast %134 : vector<8x1xf32> to vector<8x32xf32>
    %136 = arith.subf %128, %135 : vector<8x32xf32>
    %137 = arith.mulf %136, %136 : vector<8x32xf32>
    %cst_89 = arith.constant dense<0.000000e+00> : vector<8xf32>
    %138 = vector.multi_reduction <add>, %137, %cst_89 [1] : vector<8x32xf32> to vector<8xf32>
    %139 = vector.shape_cast %138 : vector<8xf32> to vector<8x1xf32>
    %cst_90 = arith.constant 3.200000e+01 : f32
    %140 = vector.broadcast %cst_90 : f32 to vector<8x1xf32>
    %141 = arith.divf %139, %140 : vector<8x1xf32>
    %142 = vector.broadcast %134 : vector<8x1xf32> to vector<8x32xf32>
    %143 = arith.subf %128, %142 : vector<8x32xf32>
    %cst_91 = arith.constant 9.99999974E-6 : f32
    %144 = vector.broadcast %cst_91 : f32 to vector<8x1xf32>
    %145 = arith.addf %141, %144 : vector<8x1xf32>
    %146 = math.rsqrt %145 : vector<8x1xf32>
    %147 = vector.broadcast %146 : vector<8x1xf32> to vector<8x32xf32>
    %148 = arith.mulf %143, %147 : vector<8x32xf32>
    %149 = vector.broadcast %129 : vector<1x32xf32> to vector<8x32xf32>
    %150 = arith.mulf %148, %149 : vector<8x32xf32>
    %151 = vector.broadcast %130 : vector<1x32xf32> to vector<8x32xf32>
    %152 = arith.addf %150, %151 : vector<8x32xf32>
    %153 = arith.truncf %152 : vector<8x32xf32> to vector<8x32xbf16>
    %cst_92 = arith.constant 0.000000e+00 : f32
    %154 = vector.broadcast %cst_92 : f32 to vector<8x32xf32>
    %c0_93 = arith.constant 0 : index
    %c0_94 = arith.constant 0 : index
    %155 = vector.load %arg12[%c0_93, %c0_94] : memref<32x128xbf16, #tpu.memory_space<vmem>>, vector<32x128xbf16>
    %cst_95 = arith.constant dense<0.000000e+00> : vector<8x128xf32>
    %156 = tpu.matmul %153, %155, %cst_95 {dimension_numbers = #tpu.dot_dimension_numbers<[1], [0], [0], [1], [0, 0, 1, 1], [], []>} : vector<8x32xbf16>, vector<32x128xbf16>, vector<8x128xf32> -> vector<8x128xf32>
    %c0_96 = arith.constant 0 : index
    %c0_97 = arith.constant 0 : index
    %157 = vector.load %arg13[%c0_96, %c0_97] : memref<1x128xf32, #tpu.memory_space<vmem>>, vector<1x128xf32>
    %158 = vector.broadcast %157 : vector<1x128xf32> to vector<8x128xf32>
    %159 = arith.addf %156, %158 : vector<8x128xf32>
    %cst_98 = arith.constant 5.000000e-01 : f32
    %160 = vector.broadcast %cst_98 : f32 to vector<8x128xf32>
    %161 = arith.mulf %160, %159 : vector<8x128xf32>
    %cst_99 = arith.constant 4.471500e-02 : f32
    %162 = vector.broadcast %cst_99 : f32 to vector<8x128xf32>
    %163 = arith.mulf %162, %159 : vector<8x128xf32>
    %164 = arith.mulf %163, %159 : vector<8x128xf32>
    %165 = arith.mulf %164, %159 : vector<8x128xf32>
    %166 = arith.addf %159, %165 : vector<8x128xf32>
    %cst_100 = arith.constant 0.797884583 : f32
    %167 = vector.broadcast %cst_100 : f32 to vector<8x128xf32>
    %168 = arith.mulf %167, %166 : vector<8x128xf32>
    %169 = math.tanh %168 : vector<8x128xf32>
    %cst_101 = arith.constant 1.000000e+00 : f32
    %170 = vector.broadcast %cst_101 : f32 to vector<8x128xf32>
    %171 = arith.addf %170, %169 : vector<8x128xf32>
    %172 = arith.mulf %161, %171 : vector<8x128xf32>
    %173 = arith.truncf %172 : vector<8x128xf32> to vector<8x128xbf16>
    %c0_102 = arith.constant 0 : index
    %c0_103 = arith.constant 0 : index
    %174 = vector.load %arg14[%c0_102, %c0_103] : memref<128x32xbf16, #tpu.memory_space<vmem>>, vector<128x32xbf16>
    %cst_104 = arith.constant dense<0.000000e+00> : vector<8x32xf32>
    %175 = tpu.matmul %173, %174, %cst_104 {dimension_numbers = #tpu.dot_dimension_numbers<[1], [0], [0], [1], [0, 0, 1, 1], [], []>} : vector<8x128xbf16>, vector<128x32xbf16>, vector<8x32xf32> -> vector<8x32xf32>
    %176 = arith.addf %154, %175 : vector<8x32xf32>
    %c0_105 = arith.constant 0 : index
    %c0_106 = arith.constant 0 : index
    %177 = vector.load %arg16[%c0_105, %c0_106] : memref<1x32xf32, #tpu.memory_space<vmem>>, vector<1x32xf32>
    %c0_107 = arith.constant 0 : index
    %c0_108 = arith.constant 0 : index
    %178 = vector.load %arg15[%c0_107, %c0_108] : memref<1x32xf32, #tpu.memory_space<vmem>>, vector<1x32xf32>
    %179 = vector.broadcast %178 : vector<1x32xf32> to vector<8x32xf32>
    %180 = arith.addf %176, %179 : vector<8x32xf32>
    %181 = vector.broadcast %177 : vector<1x32xf32> to vector<8x32xf32>
    %182 = arith.mulf %181, %180 : vector<8x32xf32>
    %183 = arith.addf %128, %182 : vector<8x32xf32>
    %c0_109 = arith.constant 0 : index
    %c0_110 = arith.constant 0 : index
    %c0_111 = arith.constant 0 : index
    %184 = vector.load %arg17[%c0_109, %c0_110, %c0_111] : memref<1x8x32xf32, #tpu.memory_space<vmem>>, vector<1x8x32xf32>
    %185 = vector.shape_cast %184 : vector<1x8x32xf32> to vector<8x32xf32>
    %186 = vector.shape_cast %183 : vector<8x32xf32> to vector<1x8x32xf32>
    tpu.vector_store %arg17[%c0_109, %c0_110, %c0_111], %186 {strides = array<i32>} : memref<1x8x32xf32, #tpu.memory_space<vmem>>, vector<1x8x32xf32>,
    return
  }
  func.func @transform_0(%arg0: i32) -> (i32, i32, i32) {
    %c0_i32 = arith.constant 0 : i32
    %c0_i32_0 = arith.constant 0 : i32
    %c0_i32_1 = arith.constant 0 : i32
    return %arg0, %c0_i32, %c0_i32_0 : i32, i32, i32
  }
  func.func @transform_1(%arg0: i32) -> (i32, i32) {
    %c0_i32 = arith.constant 0 : i32
    %c0_i32_0 = arith.constant 0 : i32
    %c0_i32_1 = arith.constant 0 : i32
    return %c0_i32, %c0_i32_0 : i32, i32
  }
  func.func @transform_2(%arg0: i32) -> (i32, i32) {
    %c0_i32 = arith.constant 0 : i32
    %c0_i32_0 = arith.constant 0 : i32
    %c0_i32_1 = arith.constant 0 : i32
    return %c0_i32, %c0_i32_0 : i32, i32
  }
  func.func @transform_3(%arg0: i32) -> (i32, i32) {
    %c0_i32 = arith.constant 0 : i32
    %c0_i32_0 = arith.constant 0 : i32
    %c0_i32_1 = arith.constant 0 : i32
    return %c0_i32, %c0_i32_0 : i32, i32
  }
  func.func @transform_4(%arg0: i32) -> (i32, i32) {
    %c0_i32 = arith.constant 0 : i32
    %c0_i32_0 = arith.constant 0 : i32
    %c0_i32_1 = arith.constant 0 : i32
    return %c0_i32, %c0_i32_0 : i32, i32
  }
  func.func @transform_5(%arg0: i32) -> (i32, i32) {
    %c0_i32 = arith.constant 0 : i32
    %c0_i32_0 = arith.constant 0 : i32
    %c0_i32_1 = arith.constant 0 : i32
    return %c0_i32, %c0_i32_0 : i32, i32
  }
  func.func @transform_6(%arg0: i32) -> (i32, i32) {
    %c0_i32 = arith.constant 0 : i32
    %c0_i32_0 = arith.constant 0 : i32
    %c0_i32_1 = arith.constant 0 : i32
    return %c0_i32, %c0_i32_0 : i32, i32
  }
  func.func @transform_7(%arg0: i32) -> (i32, i32) {
    %c0_i32 = arith.constant 0 : i32
    %c0_i32_0 = arith.constant 0 : i32
    %c0_i32_1 = arith.constant 0 : i32
    return %c0_i32, %c0_i32_0 : i32, i32
  }
  func.func @transform_8(%arg0: i32) -> (i32, i32) {
    %c0_i32 = arith.constant 0 : i32
    %c0_i32_0 = arith.constant 0 : i32
    %c0_i32_1 = arith.constant 0 : i32
    return %c0_i32, %c0_i32_0 : i32, i32
  }
  func.func @transform_9(%arg0: i32) -> (i32, i32) {
    %c0_i32 = arith.constant 0 : i32
    %c0_i32_0 = arith.constant 0 : i32
    %c0_i32_1 = arith.constant 0 : i32
    return %c0_i32, %c0_i32_0 : i32, i32
  }
  func.func @transform_10(%arg0: i32) -> (i32, i32) {
    %c0_i32 = arith.constant 0 : i32
    %c0_i32_0 = arith.constant 0 : i32
    %c0_i32_1 = arith.constant 0 : i32
    return %c0_i32, %c0_i32_0 : i32, i32
  }
  func.func @transform_11(%arg0: i32) -> (i32, i32) {
    %c0_i32 = arith.constant 0 : i32
    %c0_i32_0 = arith.constant 0 : i32
    %c0_i32_1 = arith.constant 0 : i32
    return %c0_i32, %c0_i32_0 : i32, i32
  }
  func.func @transform_12(%arg0: i32) -> (i32, i32) {
    %c0_i32 = arith.constant 0 : i32
    %c0_i32_0 = arith.constant 0 : i32
    %c0_i32_1 = arith.constant 0 : i32
    return %c0_i32, %c0_i32_0 : i32, i32
  }
  func.func @transform_13(%arg0: i32) -> (i32, i32) {
    %c0_i32 = arith.constant 0 : i32
    %c0_i32_0 = arith.constant 0 : i32
    %c0_i32_1 = arith.constant 0 : i32
    return %c0_i32, %c0_i32_0 : i32, i32
  }
  func.func @transform_14(%arg0: i32) -> (i32, i32) {
    %c0_i32 = arith.constant 0 : i32
    %c0_i32_0 = arith.constant 0 : i32
    %c0_i32_1 = arith.constant 0 : i32
    return %c0_i32, %c0_i32_0 : i32, i32
  }
  func.func @transform_15(%arg0: i32) -> (i32, i32) {
    %c0_i32 = arith.constant 0 : i32
    %c0_i32_0 = arith.constant 0 : i32
    %c0_i32_1 = arith.constant 0 : i32
    return %c0_i32, %c0_i32_0 : i32, i32
  }
  func.func @transform_16(%arg0: i32) -> (i32, i32, i32) {
    %c0_i32 = arith.constant 0 : i32
    %c0_i32_0 = arith.constant 0 : i32
    %c0_i32_1 = arith.constant 0 : i32
    return %arg0, %c0_i32, %c0_i32_0 : i32, i32, i32
  }
}

</mosaic_0001>

<bundles_post_ra>
// kernel: tpu_custom_call.1
= control target key start
LH: loop header
LB: loop body
LE: loop exit
PB: predicated region body
PF: predicated region fallthrough
CT: control target
= control target key end

     0   :  { %s2745_s0 = inlined_call_operand.vmem [shape: f32[2,8,32], index: 0, kind: input, shape index: {}]   ;;  %s2746_s1 = inlined_call_operand.hbm [shape: f32[1,32], index: 1, kind: input, shape index: {}]   ;;  %s2747_s2 = inlined_call_operand.hbm [shape: f32[1,32], index: 2, kind: input, shape index: {}]   ;;  %s2748_s3 = inlined_call_operand.vmem [shape: bf16[32,32], index: 3, kind: input, shape index: {}]   ;;  %s2749_s4 = inlined_call_operand.vmem [shape: bf16[32,32], index: 4, kind: input, shape index: {}]   ;;  %s2750_s5 = inlined_call_operand.vmem [shape: bf16[32,32], index: 5, kind: input, shape index: {}]   ;;  %s2751_s6 = inlined_call_operand.vmem [shape: bf16[32,32], index: 6, kind: input, shape index: {}]   ;;  %s2752_s7 = inlined_call_operand.hbm [shape: f32[1,32], index: 7, kind: input, shape index: {}]   ;;  %s2753_s8 = inlined_call_operand.hbm [shape: f32[1,32], index: 8, kind: input, shape index: {}]   ;;  %s2754_s9 = inlined_call_operand.hbm [shape: f32[1,32], index: 9, kind: input, shape index: {}]   ;;  %s2755_s10 = inlined_call_operand.vmem [shape: f32[1,32], index: 10, kind: input, shape index: {}]   ;;  %s2756_s11 = inlined_call_operand.vmem [shape: bf16[32,128], index: 11, kind: input, shape index: {}]   ;;  %s2757_s12 = inlined_call_operand.vmem [shape: f32[1,128], index: 12, kind: input, shape index: {}]   ;;  %s2758_s13 = inlined_call_operand.vmem [shape: bf16[128,32], index: 13, kind: input, shape index: {}]   ;;  %s2759_s14 = inlined_call_operand.vmem [shape: f32[1,32], index: 14, kind: input, shape index: {}]   ;;  %s2760_s15 = inlined_call_operand.vmem [shape: f32[1,32], index: 15, kind: input, shape index: {}]   ;;  %s2761_s16 = inlined_call_operand.hbm [shape: f32[2,8,32], index: 16, kind: output, shape index: {}]  }
   0x1   :  { %2771 = sst [smem:[#allocation26_spill]] %s2745_s0 }
   0x2   :  { %2772 = sst [smem:[#allocation27_spill]] %s2747_s2 }
   0x3   :  { %21 = vsyncpa [#allocation7], 0 }
   0x4   :  { %22 = vsyncpa [#allocation10], 0 }
   0x5   :  { %23 = vsyncpa [#allocation13], 0 }
   0x6   :  { %24 = vsyncpa [#allocation8], 0 }
   0x7   :  { %26 = vsyncpa [#allocation8 + $0x1], 0  ;;  %s2400_s21 = smov 0   ;;  %s2402_s22 = smov 0  }
   0x8   :  { %s2404_s23 = smov 0   ;;  %s2406_s24 = smov 0  }
   0x9 LB: > { %2773 = sst [smem:[#allocation20_spill]] %s2287_s21  ;;  %s2421_s25 = sadd.s32 4294967295, %s2299_s24   ;;  %s2299_s24 = sphi %s2406_s24, %s2798_s24   ;;  %s2295_s23 = sphi %s2404_s23, %s2800_s23   ;;  %s2291_s22 = sphi %s2402_s22, %s2802_s22   ;;  %s2287_s21 = sphi %s2400_s21, %s2801_s21  }
   0xa   : > { %2774 = sst [smem:[#allocation21_spill]] %s2295_s23  ;;  %s1727_s26 = sadd.s32 4294967294, %s2299_s24  }
   0xb   : > { %2775 = sst [smem:[#allocation22_spill]] %s2299_s24  ;;  %s2425_s27 = sadd.s32 1, %s2299_s24  }
   0xc   : > { %2776 = sst [smem:[#allocation23_spill]] %s2425_s27  ;;  %s380_s28 = sadd.s32 1, %s2295_s23 }
   0xd   : > { %s377_s29 = ssub.s32 %s2299_s24, %s2425_s27  ;;  %p390_p0 = scmp.ne.s32.totalorder %s2295_s23, %s2291_s22 }
   0xe   : > { %p378_p1 = scmp.eq.s32.totalorder %s377_s29, 0  ;;  %p391_p2 = scmp.eq.s32.totalorder %s2421_s25, 1 }
   0xf   : > { %p396_p3 = scmp.ne.s32.totalorder %s2291_s22, %s2287_s21  ;;  %p397_p4 = scmp.eq.s32.totalorder %s1727_s26, 1 }
  0x10   : > { %s2436_s30 = scalar_select %p378_p1, %s2295_s23, %s380_s28  }
  0x11   : > { %p2438_p5 = por %p391_p2, %p390_p0  ;;  %p2442_p6 = por %p397_p4, %p396_p3 }
  0x12   : > { %2777 = sst [smem:[#allocation24_spill]] %s2436_s30  ;;  %p1728_p7 = scmp.ge.s32.totalorder %s2299_s24, 1 }
  0x13   : > { %s2778_s0 = scalar_select %p2438_p5, 1, 0 }
  0x14   : > { %s2779_s17 = scalar_select %p2442_p6, 1, 0 }
  0x15   : > { %p404_p8 = scmp.lt.s32.totalorder %s2299_s24, 3  ;;  %p2767_p9 = scmp.eq.s32.totalorder %s2421_s25, 0 }
  0x16   : > { %2780 = sst [smem:[#allocation25_spill]] %s2779_s17  ;;  %s2301_s19 = smov [#allocation9]  }
  0x17   : > { %p2449_p10 = pnand %p1728_p7, %p404_p8  ;;  %s428_s20 = sshll.u32 %s2301_s19, 4  ;;  %s429_s20 = int_to_ptr.vmem [resolvable:$true] %s428_s20 }
  0x18   : > { %s2302_s26 = smov [#allocation12]   ;;  %s2303_s30 = smov [#allocation6]  }
  0x19   : > { %s2781_s18 = scalar_select %p2449_p10, 1, 0 }
  0x1a   : > { %p1972_p11 = pneg %p2449_p10  ;;  %s462_s28 = sshll.u32 %s2302_s26, 4  ;;  %s463_s28 = int_to_ptr.vmem [resolvable:$true] %s462_s28 }
  0x1b   : > { %s417_s23 = sshll.u32 %s2303_s30, 4  ;;  %s2108_s19 = scalar_lea.vmem %s429_s20, 16  ;;  %s2461_s23 = int_to_ptr.vmem [resolvable:$true] %s417_s23 }
  0x1c   : > { %p2457_p12 = pnand %p2767_p9, %p1972_p11  ;;  %p2109_p0 = scmp.ne.s32.totalorder %s429_s20, %s2108_s19 }
  0x1d   : > { %s2115_s26 = scalar_lea.vmem %s429_s20, 32  ;;  %p2116_p3 = scmp.lt.s32.totalorder %s429_s20, %s429_s20 }
  0x1e   : > { %p2465_p13 = pneg %p2457_p12  ;;  %p2117_p4 = scmp.lt.s32.totalorder %s2115_s26, %s2108_s19 }
  0x20   : > { %p2111_p1 = pnand %p2109_p0, %p2465_p13  ;;  %p2118_p7 = por %p2117_p4, %p2116_p3 }
  0x22   : > { %p2112_p2 = pneg %p2111_p1 }
  0x24   : > { %p2119_p8 = pnand %p2118_p7, %p2112_p2 }
  0x26   : > { %2122 = shalt.err (!%p2119_p8)
}
  0x27   : > { %s2784_s2 = sld [smem:[#allocation27_spill]]  ;;  %s2134_s21 = scalar_lea.vmem %s463_s28, 16 }
  0x28   : > { %p2135_p11 = scmp.ne.s32.totalorder %s463_s28, %s2134_s21  ;;  %s2141_s24 = scalar_lea.vmem %s463_s28, 32 }
  0x29   : > { %p2142_p0 = scmp.lt.s32.totalorder %s463_s28, %s463_s28  ;;  %p2143_p1 = scmp.lt.s32.totalorder %s2141_s24, %s2134_s21 }
  0x2a   : > { %p2137_p9 = pnand %p2135_p11, %p2465_p13 }
  0x2b   : > { %p2144_p5 = por %p2143_p1, %p2142_p0 }
  0x2c   : > { %p2138_p6 = pneg %p2137_p9 }
  0x2d   : > { %1978 = dma.hbm_to_vmem [thread:$0]  (!%p2457_p12), %s2784_s2, 16, %s429_s20, [#allocation10]  }
  0x2e   : > { %p2145_p10 = pnand %p2144_p5, %p2138_p6 }
  0x30   : > { %2148 = shalt.err (!%p2145_p10)
}
  0x31   : > { %1984 = dma.hbm_to_vmem [thread:$0]  (!%p2457_p12), %s2753_s8, 16, %s463_s28, [#allocation13]  }
  0x32   : > { %s2160_s17 = scalar_lea.vmem %s2461_s23, 16  ;;  %s2167_s21 = scalar_lea.vmem %s2461_s23, 32 }
  0x33   : > { %p2161_p2 = scmp.ne.s32.totalorder %s2461_s23, %s2160_s17  ;;  %p2168_p5 = scmp.lt.s32.totalorder %s2461_s23, %s2461_s23 }
  0x34   : > { %p2169_p6 = scmp.lt.s32.totalorder %s2167_s21, %s2160_s17 }
  0x35   : > { %p2163_p9 = pnand %p2161_p2, %p2465_p13 }
  0x36   : > { %p2170_p10 = por %p2169_p6, %p2168_p5 }
  0x37   : > { %p2164_p3 = pneg %p2163_p9 }
  0x39   : > { %p2171_p4 = pnand %p2170_p10, %p2164_p3 }
  0x3b   : > { %2174 = shalt.err (!%p2171_p4)
}
  0x3c   : > { %1975 = dma.hbm_to_vmem [thread:$0]  (!%p2457_p12), %s2746_s1, 16, %s2461_s23, [#allocation7]  }
  0x3d   : > { %s2304_s28 = smov [#allocation11]   ;;  %s2305_s19 = smov [#allocation14]  }
  0x3e   : > { %s451_s30 = sshll.u32 %s2304_s28, 4  ;;  %s473_s26 = sshll.u32 %s2305_s19, 4  ;;  %s452_s30 = int_to_ptr.vmem [resolvable:$true] %s451_s30  ;;  %s474_s26 = int_to_ptr.vmem [resolvable:$true] %s473_s26 }
  0x3f   : > { %s2186_s2 = scalar_lea.vmem %s452_s30, 16  ;;  %s2193_s17 = scalar_lea.vmem %s452_s30, 32 }
  0x40   : > { %p2187_p7 = scmp.ne.s32.totalorder %s452_s30, %s2186_s2  ;;  %p2194_p0 = scmp.lt.s32.totalorder %s452_s30, %s452_s30 }
  0x41   : > { %p2195_p1 = scmp.lt.s32.totalorder %s2193_s17, %s2186_s2 }
  0x42   : > { %p2189_p8 = pnand %p2187_p7, %p2465_p13 }
  0x43   : > { %p2196_p2 = por %p2195_p1, %p2194_p0 }
  0x44   : > { %p2190_p11 = pneg %p2189_p8 }
  0x46   : > { %p2197_p9 = pnand %p2196_p2, %p2190_p11 }
  0x48   : > { %2200 = shalt.err (!%p2197_p9)
}
  0x49   : > { %1981 = dma.hbm_to_vmem [thread:$0]  (!%p2457_p12), %s2752_s7, 16, %s452_s30, [#allocation10]  }
  0x4a   : > { %s2212_s24 = scalar_lea.vmem %s474_s26, 16  ;;  %s2219_s20 = scalar_lea.vmem %s474_s26, 32 }
  0x4b   : > { %p2213_p3 = scmp.ne.s32.totalorder %s474_s26, %s2212_s24  ;;  %p2220_p10 = scmp.lt.s32.totalorder %s474_s26, %s474_s26 }
  0x4c   : > { %p2221_p4 = scmp.lt.s32.totalorder %s2219_s20, %s2212_s24 }
  0x4d   : > { %p2215_p5 = pnand %p2213_p3, %p2465_p13 }
  0x4e   : > { %p2222_p7 = por %p2221_p4, %p2220_p10 }
  0x4f   : > { %p2216_p6 = pneg %p2215_p5 }
  0x51   : > { %p2223_p8 = pnand %p2222_p7, %p2216_p6 }
  0x53   : > { %2226 = shalt.err (!%p2223_p8)
}
  0x54   : > { %1987 = dma.hbm_to_vmem [thread:$0]  (!%p2457_p12), %s2754_s9, 16, %s474_s26, [#allocation13]  }
  0x55   : > { %p2785_p11 = scmp.ne.s32.totalorder %s2781_s18, 0 }
  0x56   : > { %p2786_p0 = scmp.eq.s32.totalorder (!%p2785_p11), %s2421_s25, 0 }
  0x57   : > { %511 = sbr.rel (%p2785_p11) target bundleno = 2579 (0xa13), region = 84 }
  0x5c   : > { %2270 = dma.done.wait (%p2786_p0), [#allocation7], 16   ;;  %p2787_p13 = pmov %p2786_p0 }
  0x5d   : > { %p2788_p1 = pmov %p2786_p0 }
  0x5e   : > { %2272 = vsyncadd (%p2787_p13), [#allocation7], 4294967280 }
  0x5f   : > { %2274 = dma.done.wait (%p2788_p1), [#allocation10], 32   ;;  %p2789_p2 = pmov %p2786_p0 }
  0x60   : > { %p2790_p9 = pmov %p2786_p0 }
  0x61   : > { %2276 = vsyncadd (%p2789_p2), [#allocation10], 4294967264 }
  0x62   : > { %2278 = dma.done.wait (%p2790_p9), [#allocation13], 32   ;;  %p2791_p12 = pmov %p2786_p0 }
  0x63   : > { %p576_p3 = scmp.lt.s32.totalorder %s2421_s25, 1  ;;  %s2792_s19 = sld [smem:[#allocation26_spill]]  ;;  %vm584_vm0 = vcmask 261120   ;;  %v2048_v7 = vld [vmem:[%s2748_s3 + $0x8] sm:$0xff]   ;;  %v2306_v8 = vmov 0.0   ;;  %vm2307_vm1 = vmmov 0  }
  0x64   : > { %2280 = vsyncadd (%p2791_p12), [#allocation13], 4294967264  ;;  %1842 = vmatprep.subr.bf16.mxu0 %v2306_v8  ;;  %1846 = vmatprep.mubr.msk.bf16.mxu0 %vm2307_vm1, %v2306_v8  ;;  %v2049_v9 = vld [vmem:[%s2748_s3] sm:$0xff]   ;;  %v1743_v14 = vld [vmem:[#allocation6] ss:$0 sm:$0xff]  ;;  %vm674_vm2 = vcmask 257024  }
  0x65   : > { %s577_s27 = scalar_select %p576_p3, %s2421_s25, 1  ;;  %1843 = vmatpush3.bf16.msra.mxu0 %v2048_v7  ;;  %1866 = vmatprep.subr.bf16.mxu1 %v2306_v8  ;;  %v1744_v16 = vld [vmem:[#allocation9] ss:$0 sm:$0xff]  ;;  %v2050_v19 = vld [vmem:[%s2749_s4 + $0x8] sm:$0xff]   ;;  %v2051_v21 = vld [vmem:[%s2749_s4] sm:$0xff]   ;;  %vm795_vm3 = vcmask 64512  }
  0x66   : > { %1844 = vmatprep.subr.bf16.mxu0 %v2306_v8  ;;  %1868 = vmatprep.mubr.msk.bf16.mxu1 %vm2307_vm1, %v2306_v8  ;;  %v2052_v22 = vld [vmem:[%s2750_s5 + $0x8] sm:$0xff]   ;;  %v2053_v23 = vld [vmem:[%s2750_s5] sm:$0xff]   ;;  %s2309_s17 = smov 120   ;;  %vm858_vm4 = vcmask 1043456   ;;  %s2310_s21 = smov 104   ;;  %vm903_vm5 = vcmask 60416  }
  0x67   : > { %s1742_s18 = sshll.u32 %s577_s27, 3  ;;  %s2311_s23 = smov 8   ;;  %vm1035_vm6 = vcmask 126016   ;;  %vm1167_vm7 = vcmask 191616   ;;  %vm1299_vm8 = vcmask 257216  }
  0x68   : > { %s2312_s24 = smov 16   ;;  %s573_s27 = sand.u32 1, %s2291_s22  }
  0x69   : > { %s579_s26 = scalar_lea.vmem %s2792_s19, %s1742_s18  ;;  %1845 = vmatpush3.bf16.msra.mxu0 %v2049_v9  ;;  %s2313_s18 = smov 24  }
  0x6a   : > { %v2529_v0 = vld [vmem:[%s579_s26] sm:$0xff]  ;;  %1850 = vmatprep.subr.bf16.mxu0 %v2306_v8  ;;  %s2308_s26 = smov 112   ;;  %s1605_s28 = scalar_lea.sflag [#allocation8], %s573_s27 }
  0x6b   : > { %v585_v1 = vsel %vm584_vm0, %v2529_v0, 0.0  ;;  %p2793_p6 = scmp.ne.s32.totalorder %s2778_s0, 0 }
  0x6c   : > { %586 = vadd.xlane.f32.xlu0 %v585_v1 }
  0xf5   : > { %v587_v2 = vpop.xlane.xlu0 %586 }
  0xf6   : > { %v589_v3 = vmul.f32 0.03125, %v587_v2 }
  0xf8   : > { %v590_v4 = vsub.f32 %v2529_v0, %v589_v3 }
  0xfa   : > { %v591_v5 = vmul.f32 %v590_v4, %v590_v4 }
  0xfc   : > { %v592_v6 = vsel %vm584_vm0, %v591_v5, 0.0 }
  0xfd   : > { %593 = vadd.xlane.f32.xlu0 %v592_v6 }
 0x186   : > { %v594_v10 = vpop.xlane.xlu0 %593 }
 0x187   : > { %v595_v11 = vmul.f32 0.03125, %v594_v10 }
 0x189   : > { %v596_v12 = vadd.f32 1e-05, %v595_v11 }
 0x18b   : > { %2075 = vrsqrt.f32 %v596_v12 }
 0x198   : > { %v2076_v13 = vpop.eup %2075 }
 0x199   : > { %v598_v15 = vmul.f32 %v2076_v13, %v590_v4 }
 0x19b   : > { %v605_v17 = vmul.f32 %v1743_v14, %v598_v15 }
 0x19d   : > { %v612_v18 = vadd.f32 %v1744_v16, %v605_v17 }
 0x19f   : > { %v613_v20 = vpack.c.bf16 %v612_v18, %v612_v18 }
 0x1a1   : > { %1847 = vmatmul.mubr.msk.bf16.vlgmr.msra.gmra.mxu0 %vm584_vm0, %v613_v20 }
 0x1a2   : > { %1851 = vmatpush3.bf16.msra.mxu0 %v2050_v19  ;;  %1854 = vmatprep.mubr.msk.bf16.mxu0 %vm2307_vm1, %v2306_v8 }
 0x1a3   : > { %1852 = vmatprep.subr.bf16.mxu0 %v2306_v8 }
 0x1a6   : > { %1853 = vmatpush3.bf16.msra.mxu0 %v2051_v21 }
 0x1a7   : > { %1858 = vmatprep.subr.bf16.mxu0 %v2306_v8 }
 0x1a9   : > { %1855 = vmatmul.mubr.msk.bf16.vlgmr.msra.gmra.mxu0 %vm584_vm0, %v613_v20 }
 0x1aa   : > { %1859 = vmatpush3.bf16.msra.mxu0 %v2052_v22  ;;  %1862 = vmatprep.mubr.msk.bf16.mxu0 %vm2307_vm1, %v2306_v8 }
 0x1ab   : > { %1860 = vmatprep.subr.bf16.mxu0 %v2306_v8 }
 0x1ae   : > { %1861 = vmatpush3.bf16.msra.mxu0 %v2053_v23 }
 0x1af   : > { %1872 = vmatprep.subr.bf16.mxu0 %v2306_v8 }
 0x1b1   : > { %1863 = vmatmul.mubr.msk.bf16.vlgmr.msra.gmra.mxu0 %vm584_vm0, %v613_v20 }
 0x1b2   : > { %1874 = vmatprep.mubr.msk.bf16.mxu0 %vm2307_vm1, %v2306_v8 }
 0x261   : > { %v667_v24 = vpop.f32.mrf.mxu0 }
 0x262   : > { %v673_v25 = vpack.c.bf16 %v667_v24, %v667_v24 }
 0x263   : > { %v1848_v26 = vpop.f32.mrf.mxu0 }
 0x264   : > { %675 = vst.msk [vmem:[#allocation2] sm:$0xf] %vm674_vm2, %v673_v25 }
 0x265   : > { %v670_v27 = vpop.f32.mrf.mxu0 }
 0x267   : > { %v1849_v28 = vpop.f32.mrf.mxu0 }
 0x269   : > { %v726_v29 = vpop.f32.mrf.mxu0 }
 0x26a   : > { %v732_v30 = vpack.c.bf16 %v726_v29, %v726_v29 }
 0x26b   : > { %v1856_v31 = vpop.f32.mrf.mxu0  ;;  %v2056_v43 = vld [vmem:[#allocation2] ss:$0 sps:$4 sm:$0xff]  }
 0x26c   : > { %733 = vst.msk [vmem:[#allocation3] sm:$0xf] %vm674_vm2, %v732_v30  ;;  %v792_v44 = vld [vmem:[#allocation2] sm:$0xf] }
 0x26d   : > { %v729_v32 = vpop.f32.mrf.mxu0  ;;  %v2057_v47 = vld [vmem:[#allocation2] ss:$0 sps:$4 sm:$0xff]  }
 0x26e   : > { %v2059_v49 = vld [vmem:[#allocation2] ss:$0 sps:$4 sm:$0xff]  }
 0x26f   : > { %v1857_v33 = vpop.f32.mrf.mxu0 }
 0x271   : > { %v784_v34 = vpop.f32.mrf.mxu0 }
 0x272   : > { %v790_v35 = vpack.c.bf16 %v784_v34, %v784_v34 }
 0x273   : > { %v1864_v36 = vpop.f32.mrf.mxu0  ;;  %v793_v37 = vld [vmem:[#allocation3] sm:$0xf] }
 0x274   : > { %v2054_v38 = vld [vmem:[#allocation3] ss:$0 sps:$4 sm:$0xff]   ;;  %791 = vst.msk [vmem:[#allocation4] sm:$0xf] %vm674_vm2, %v790_v35  ;;  %v800_v39 = vsel %vm795_vm3, %v793_v37, 0 }
 0x275   : > { %v2055_v40 = vld [vmem:[#allocation3] ss:$0 sps:$4 sm:$0xff]   ;;  %v787_v41 = vpop.f32.mrf.mxu0  ;;  %1867 = vmatpush3.bf16.xpose.msra.mxu1 %v800_v39  ;;  %1048 = vrot.lane.b32.xlu0 %v2054_v38, %s2308_s26 }
 0x276   : > { %916 = vrot.lane.b32.xlu1 %v2055_v40, %s2309_s17  ;;  %1878 = vmatprep.subr.bf16.mxu1 %v2306_v8  ;;  %v2058_v48 = vld [vmem:[#allocation3] ss:$0 sps:$4 sm:$0xff]  }
 0x277   : > { %v1865_v42 = vpop.f32.mrf.mxu0 }
 0x27a   : > { %911 = vrot.lane.b32.xlu1 %v2056_v43, %s2309_s17 }
 0x27b   : > { %v794_v45 = vld [vmem:[#allocation4] sm:$0xf] }
 0x27c   : > { %1869 = vmatmul.mubr.msk.bf16.vlgmr.msra.gmra.mxu1 %vm795_vm3, %v792_v44  ;;  %v860_v46 = vsel %vm858_vm4, %v794_v45, 0  ;;  %v2060_v36 = vld [vmem:[#allocation4] ss:$0 sps:$4 sm:$0xff]  }
 0x27d   : > { %1873 = vmatpush3.bf16.msra.mxu0 %v860_v46  ;;  %1880 = vmatprep.mubr.msk.bf16.mxu1 %vm2307_vm1, %v2306_v8  ;;  %v2061_v40 = vld [vmem:[#allocation4] ss:$0 sps:$4 sm:$0xff]  }
 0x27e   : > { %1043 = vrot.lane.b32.xlu1 %v2057_v47, %s2308_s26  ;;  %1884 = vmatprep.subr.bf16.mxu0 %v2306_v8  ;;  %v2062_v47 = vld [vmem:[#allocation4] ss:$0 sps:$4 sm:$0xff]  }
 0x282   : > { %1180 = vrot.lane.b32.xlu1 %v2058_v48, %s2310_s21 }
 0x286   : > { %1175 = vrot.lane.b32.xlu1 %v2059_v49, %s2310_s21 }
 0x2e7   : > { %v1049_v53 = vpop.permute.xlu0 %1048 }
 0x2e8   : > { %v917_v50 = vpop.permute.xlu1 %916  ;;  %v1054_v55 = vsel %vm795_vm3, %v1049_v53, 0 }
 0x2e9   : > { %v922_v51 = vsel %vm795_vm3, %v917_v50, 0 }
 0x2ea   : > { %1879 = vmatpush3.bf16.xpose.msra.mxu1 %v922_v51 }
 0x2eb   : > { %1890 = vmatprep.subr.bf16.mxu1 %v2306_v8 }
 0x2ec   : > { %v912_v52 = vpop.permute.xlu1 %911 }
 0x2f0   : > { %v1044_v54 = vpop.permute.xlu1 %1043 }
 0x2f1   : > { %1881 = vmatmul.mubr.msk.bf16.vlgmr.msra.gmra.mxu1 %vm795_vm3, %v912_v52 }
 0x2f2   : > { %1891 = vmatpush3.bf16.xpose.msra.mxu1 %v1054_v55  ;;  %1892 = vmatprep.mubr.msk.bf16.mxu1 %vm2307_vm1, %v2306_v8 }
 0x2f3   : > { %1902 = vmatprep.subr.bf16.mxu1 %v2306_v8 }
 0x2f4   : > { %v1181_v56 = vpop.permute.xlu1 %1180 }
 0x2f5   : > { %v1186_v57 = vsel %vm795_vm3, %v1181_v56, 0 }
 0x2f8   : > { %v1176_v58 = vpop.permute.xlu1 %1175 }
 0x2f9   : > { %1893 = vmatmul.mubr.msk.bf16.vlgmr.msra.gmra.mxu1 %vm795_vm3, %v1044_v54 }
 0x2fa   : > { %1903 = vmatpush3.bf16.xpose.msra.mxu1 %v1186_v57  ;;  %1904 = vmatprep.mubr.msk.bf16.mxu1 %vm2307_vm1, %v2306_v8 }
 0x2fb   : > { %1914 = vmatprep.subr.bf16.mxu1 %v2306_v8 }
 0x301   : > { %1905 = vmatmul.mubr.msk.bf16.vlgmr.msra.gmra.mxu1 %vm795_vm3, %v1176_v58 }
 0x302   : > { %1918 = vmatprep.mubr.msk.bf16.mxu1 %vm2307_vm1, %v2306_v8 }
 0x33c   : > { %v836_v59 = vpop.f32.mrf.mxu1 }
 0x33d   : > { %v842_v60 = vmul.f32 0.35355338, %v836_v59 }
 0x33e   : > { %v1870_v61 = vpop.f32.mrf.mxu1 }
 0x33f   : > { %v843_v62 = vsel %vm795_vm3, %v842_v60, -inf }
 0x340   : > { %844 = vmax.xlane.f32.xlu1 %v843_v62  ;;  %v839_v63 = vpop.f32.mrf.mxu1 }
 0x342   : > { %v1871_v1 = vpop.f32.mrf.mxu1 }
 0x3b1   : > { %v958_v2 = vpop.f32.mrf.mxu1 }
 0x3b2   : > { %v964_v3 = vmul.f32 0.35355338, %v958_v2 }
 0x3b3   : > { %v1882_v4 = vpop.f32.mrf.mxu1 }
 0x3b4   : > { %v965_v5 = vsel %vm795_vm3, %v964_v3, -inf }
 0x3b5   : > { %966 = vmax.xlane.f32.xlu0 %v965_v5  ;;  %v961_v6 = vpop.f32.mrf.mxu1 }
 0x3b7   : > { %v1883_v7 = vpop.f32.mrf.mxu1 }
 0x3b9   : > { %v1090_v9 = vpop.f32.mrf.mxu1 }
 0x3ba   : > { %v1096_v10 = vmul.f32 0.35355338, %v1090_v9 }
 0x3bb   : > { %v1894_v11 = vpop.f32.mrf.mxu1 }
 0x3bc   : > { %v1097_v12 = vsel %vm795_vm3, %v1096_v10, -inf }
 0x3bd   : > { %1098 = vmax.xlane.f32.xlu1 %v1097_v12  ;;  %v1093_v13 = vpop.f32.mrf.mxu1 }
 0x3bf   : > { %v1895_v14 = vpop.f32.mrf.mxu1 }
 0x3c1   : > { %v1222_v15 = vpop.f32.mrf.mxu1 }
 0x3c2   : > { %v1228_v16 = vmul.f32 0.35355338, %v1222_v15 }
 0x3c3   : > { %v1906_v17 = vpop.f32.mrf.mxu1 }
 0x3c4   : > { %v1229_v18 = vsel %vm795_vm3, %v1228_v16, -inf }
 0x3c5   : > { %1230 = vmax.xlane.f32.xlu1 %v1229_v18  ;;  %v1225_v19 = vpop.f32.mrf.mxu1 }
 0x3c6   : > { %v2063_v19 = vld [vmem:[%s2751_s6 + $0x8] sm:$0xff]  }
 0x3c7   : > { %v1907_v20 = vpop.f32.mrf.mxu1  ;;  %1915 = vmatpush3.bf16.msra.mxu1 %v2063_v19 }
 0x3c8   : > { %v2064_v20 = vld [vmem:[%s2751_s6] sm:$0xff]   ;;  %1916 = vmatprep.subr.bf16.mxu1 %v2306_v8 }
 0x3c9   : > { %v845_v21 = vpop.xlane.xlu1 %844 }
 0x3ca   : > { %v846_v22 = vsub.f32 %v842_v60, %v845_v21 }
 0x3cb   : > { %1917 = vmatpush3.bf16.msra.mxu1 %v2064_v20 }
 0x3cc   : > { %v847_v23 = vmul.f32 1.442695, %v846_v22  ;;  %1930 = vmatprep.subr.bf16.mxu1 %v2306_v8 }
 0x3ce   : > { %2077 = vpow2.f32 %v847_v23 }
 0x3db   : > { %v2078_v24 = vpop.eup %2077 }
 0x3dc   : > { %v849_v25 = vsel %vm795_vm3, %v2078_v24, 0.0 }
 0x3dd   : > { %850 = vadd.xlane.f32.xlu0 %v849_v25 }
 0x43e   : > { %v967_v26 = vpop.xlane.xlu0 %966 }
 0x43f   : > { %v968_v27 = vsub.f32 %v964_v3, %v967_v26 }
 0x441   : > { %v969_v28 = vmul.f32 1.442695, %v968_v27 }
 0x443   : > { %2079 = vpow2.f32 %v969_v28 }
 0x446   : > { %v1099_v29 = vpop.xlane.xlu1 %1098 }
 0x447   : > { %v1100_v30 = vsub.f32 %v1096_v10, %v1099_v29 }
 0x449   : > { %v1101_v31 = vmul.f32 1.442695, %v1100_v30  ;;  %v1774_v30 = vld [vmem:[#allocation11] ss:$0 sm:$0xff] }
 0x44b   : > { %2081 = vpow2.f32 %v1101_v31 }
 0x44e   : > { %v1231_v38 = vpop.xlane.xlu1 %1230 }
 0x44f   : > { %v1232_v39 = vsub.f32 %v1228_v16, %v1231_v38 }
 0x450   : > { %v2080_v32 = vpop.eup %2079 }
 0x451   : > { %v971_v33 = vsel %vm795_vm3, %v2080_v32, 0.0  ;;  %v1233_v41 = vmul.f32 1.442695, %v1232_v39 }
 0x452   : > { %972 = vadd.xlane.f32.xlu1 %v971_v33 }
 0x458   : > { %v2082_v34 = vpop.eup %2081 }
 0x459   : > { %v1103_v35 = vsel %vm795_vm3, %v2082_v34, 0.0 }
 0x45a   : > { %1104 = vadd.xlane.f32.xlu0 %v1103_v35 }
 0x463   : > { %1112 = vrot.lane.b32.xlu1 %v2060_v36, %s2308_s26 }
 0x466   : > { %v851_v37 = vpop.xlane.xlu0 %850 }
 0x467   : > { %2083 = vrcp.f32 %v851_v37 }
 0x468   : > { %2085 = vpow2.f32 %v1233_v41 }
 0x470   : > { %980 = vrot.lane.b32.xlu0 %v2061_v40, %s2309_s17  ;;  %s1796_s17 = sshll.u32 %s2421_s25, 7  ;;  %s2314_s25 = smov [#allocation15]  }
 0x471   : > { %s2709_s2 = scalar_lea.hbm %s2761_s16, %s1796_s17 }
 0x474   : > { %v2084_v42 = vpop.eup %2083 }
 0x475   : > { %v853_v43 = vmul.f32 %v2084_v42, %v2078_v24  ;;  %v2086_v45 = vpop.eup %2085 }
 0x476   : > { %v1235_v46 = vsel %vm795_vm3, %v2086_v45, 0.0 }
 0x477   : > { %v854_v44 = vpack.c.bf16 %v853_v43, %v853_v43 }
 0x479   : > { %1875 = vmatmul.mubr.msk.bf16.vlgmr.msra.gmra.mxu0 %vm795_vm3, %v854_v44 }
 0x47a   : > { %1886 = vmatprep.mubr.msk.bf16.mxu0 %vm2307_vm1, %v2306_v8 }
 0x487   : > { %1236 = vadd.xlane.f32.xlu1 %v1235_v46 }
 0x498   : > { %1244 = vrot.lane.b32.xlu1 %v2062_v47, %s2310_s21 }
 0x4db   : > { %v973_v48 = vpop.xlane.xlu1 %972 }
 0x4dc   : > { %2087 = vrcp.f32 %v973_v48 }
 0x4df   : > { %v1113_v54 = vpop.permute.xlu1 %1112 }
 0x4e0   : > { %v1118_v56 = vsel %vm858_vm4, %v1113_v54, 0 }
 0x4e3   : > { %v1105_v49 = vpop.xlane.xlu0 %1104 }
 0x4e4   : > { %2089 = vrcp.f32 %v1105_v49 }
 0x4e7   : > { %v981_v50 = vpop.permute.xlu0 %980 }
 0x4e8   : > { %v986_v51 = vsel %vm858_vm4, %v981_v50, 0  ;;  %v1779_v50 = vld [vmem:[#allocation14] ss:$0 sm:$0xff] }
 0x4e9   : > { %v2088_v52 = vpop.eup %2087  ;;  %1885 = vmatpush3.bf16.msra.mxu0 %v986_v51 }
 0x4ea   : > { %1896 = vmatprep.subr.bf16.mxu0 %v2306_v8  ;;  %v975_v53 = vmul.f32 %v2088_v52, %v2080_v32  ;;  %v1778_v32 = vld [vmem:[#allocation12] ss:$0 sm:$0xff]  ;;  %v1780_v52 = vld [vmem:[%s2755_s10] ss:$0 sm:$0xff] }
 0x4ec   : > { %v976_v55 = vpack.c.bf16 %v975_v53, %v975_v53 }
 0x4ee   : > { %1887 = vmatmul.mubr.msk.bf16.vlgmr.msra.gmra.mxu0 %vm795_vm3, %v976_v55 }
 0x4ef   : > { %1897 = vmatpush3.bf16.msra.mxu0 %v1118_v56  ;;  %1898 = vmatprep.mubr.msk.bf16.mxu0 %vm2307_vm1, %v2306_v8  ;;  %v2067_v56 = vld [vmem:[%s2758_s13 + $0x38] sm:$0xff]  }
 0x4f0   : > { %1908 = vmatprep.subr.bf16.mxu0 %v2306_v8 }
 0x4f1   : > { %v2090_v57 = vpop.eup %2089 }
 0x4f2   : > { %v1107_v58 = vmul.f32 %v2090_v57, %v2082_v34  ;;  %v2068_v57 = vld [vmem:[%s2758_s13 + $0x30] sm:$0xff]  }
 0x4f4   : > { %v1108_v59 = vpack.c.bf16 %v1107_v58, %v1107_v58  ;;  %v2069_v58 = vld [vmem:[%s2758_s13 + $0x28] sm:$0xff]  }
 0x4f6   : > { %1899 = vmatmul.mubr.msk.bf16.vlgmr.msra.gmra.mxu0 %vm795_vm3, %v1108_v59  ;;  %v2070_v59 = vld [vmem:[%s2758_s13 + $0x20] sm:$0xff]  }
 0x4f7   : > { %1910 = vmatprep.mubr.msk.bf16.mxu0 %vm2307_vm1, %v2306_v8 }
 0x510   : > { %v1237_v60 = vpop.xlane.xlu1 %1236 }
 0x511   : > { %2091 = vrcp.f32 %v1237_v60  ;;  %v2071_v60 = vld [vmem:[%s2758_s13 + $0x18] sm:$0xff]  }
 0x514   : > { %v1245_v61 = vpop.permute.xlu1 %1244 }
 0x515   : > { %v1250_v62 = vsel %vm858_vm4, %v1245_v61, 0  ;;  %v2072_v61 = vld [vmem:[%s2758_s13 + $0x10] sm:$0xff]  }
 0x516   : > { %1909 = vmatpush3.bf16.msra.mxu0 %v1250_v62  ;;  %v2073_v62 = vld [vmem:[%s2758_s13 + $0x8] sm:$0xff]  }
 0x517   : > { %1922 = vmatprep.subr.bf16.mxu0 %v2306_v8 }
 0x51e   : > { %v2092_v63 = vpop.eup %2091 }
 0x51f   : > { %v1239_v1 = vmul.f32 %v2092_v63, %v2086_v45  ;;  %v2065_v45 = vld [vmem:[%s2756_s11 + $0x8] sm:$0xff]   ;;  %v2074_v63 = vld [vmem:[%s2758_s13] sm:$0xff]  }
 0x521   : > { %v1240_v2 = vpack.c.bf16 %v1239_v1, %v1239_v1  ;;  %v1781_v1 = vld [vmem:[%s2757_s12] ss:$0 sm:$0xff] }
 0x523   : > { %1911 = vmatmul.mubr.msk.bf16.vlgmr.msra.gmra.mxu0 %vm795_vm3, %v1240_v2 }
 0x524   : > { %1926 = vmatprep.mubr.msk.bf16.mxu0 %vm2307_vm1, %v2306_v8  ;;  %1923 = vmatpush3.bf16.msra.mxu0 %v2065_v45 }
 0x525   : > { %1924 = vmatprep.subr.bf16.mxu0 %v2306_v8 }
 0x539   : > { %v896_v3 = vpop.f32.mrf.mxu0 }
 0x53a   : > { %v902_v4 = vpack.c.bf16 %v896_v3, %v896_v3 }
 0x53b   : > { %v1876_v5 = vpop.f32.mrf.mxu0 }
 0x53c   : > { %904 = vst.msk [vmem:[#allocation5] sm:$0xf] %vm903_vm5, %v902_v4 }
 0x53d   : > { %v899_v6 = vpop.f32.mrf.mxu0 }
 0x53f   : > { %v1877_v7 = vpop.f32.mrf.mxu0 }
 0x5ae   : > { %v1022_v9 = vpop.f32.mrf.mxu0 }
 0x5af   : > { %v1799_v10 = vpack.c.bf16 %v1022_v9, %v1022_v9 }
 0x5b0   : > { %v1888_v11 = vpop.f32.mrf.mxu0 }
 0x5b1   : > { %1032 = vrot.lane.b32.xlu0 %v1799_v10, %s2311_s23 }
 0x5b2   : > { %v1025_v12 = vpop.f32.mrf.mxu0 }
 0x5b4   : > { %v1889_v13 = vpop.f32.mrf.mxu0 }
 0x5b6   : > { %v1154_v14 = vpop.f32.mrf.mxu0 }
 0x5b7   : > { %v1800_v15 = vpack.c.bf16 %v1154_v14, %v1154_v14 }
 0x5b8   : > { %v1900_v16 = vpop.f32.mrf.mxu0 }
 0x5b9   : > { %1164 = vrot.lane.b32.xlu1 %v1800_v15, %s2312_s24 }
 0x5ba   : > { %v1157_v17 = vpop.f32.mrf.mxu0 }
 0x5bb   : > { %v1785_v17 = vld [vmem:[%s2759_s14] ss:$0 sm:$0xff] }
 0x5bc   : > { %v1901_v18 = vpop.f32.mrf.mxu0 }
 0x5bd   : > { %v1794_v18 = vld [vmem:[%s2760_s15] ss:$0 sm:$0xff] }
 0x5e3   : > { %v1286_v21 = vpop.f32.mrf.mxu0 }
 0x5e4   : > { %v1801_v22 = vpack.c.bf16 %v1286_v21, %v1286_v21 }
 0x5e5   : > { %v1912_v23 = vpop.f32.mrf.mxu0 }
 0x5e6   : > { %1296 = vrot.lane.b32.xlu0 %v1801_v22, %s2313_s18  ;;  %s1741_s18 = sshll.u32 %s573_s27, 3 }
 0x5e7   : > { %v1289_v24 = vpop.f32.mrf.mxu0  ;;  %s575_s21 = scalar_lea.vmem [#allocation15], %s1741_s18  ;;  %s2231_s18 = sshll.u32 %s2314_s25, 4  ;;  %s2232_s18 = int_to_ptr.vmem [resolvable:$false] %s2231_s18 }
 0x5e8   : > { %s1618_s23 = sshll.u32 %s575_s21, 4  ;;  %s2233_s30 = scalar_lea.vmem %s2232_s18, 256  ;;  %s1619_s23 = int_to_ptr.vmem [resolvable:$true] %s1618_s23 }
 0x5e9   : > { %v1913_v25 = vpop.f32.mrf.mxu0  ;;  %s2227_s29 = scalar_lea.vmem %s1619_s23, 128  ;;  %p2234_p7 = scmp.lt.s32.totalorder %s1619_s23, %s2232_s18 }
 0x5ea   : > { %p2228_p5 = scmp.ne.s32.totalorder %s1619_s23, %s2227_s29  ;;  %p2235_p8 = scmp.lt.s32.totalorder %s2233_s30, %s2227_s29 }
 0x5ec   : > { %p2229_p10 = pnand %p2228_p5, %p2793_p6  ;;  %p2236_p11 = por %p2235_p8, %p2234_p7 }
 0x5ee   : > { %p2230_p4 = pneg %p2229_p10 }
 0x5f0   : > { %p2237_p0 = pnand %p2236_p11, %p2230_p4 }
 0x623   : > { %v1033_v26 = vpop.permute.xlu0 %1032 }
 0x624   : > { %1036 = vst.msk [vmem:[#allocation5] sm:$0xf] %vm1035_vm6, %v1033_v26 }
 0x62b   : > { %v1165_v27 = vpop.permute.xlu1 %1164 }
 0x62c   : > { %1168 = vst.msk [vmem:[#allocation5] sm:$0xf] %vm1167_vm7, %v1165_v27 }
 0x658   : > { %v1297_v28 = vpop.permute.xlu0 %1296 }
 0x659   : > { %1300 = vst.msk [vmem:[#allocation5] sm:$0xf] %vm1299_vm8, %v1297_v28 }
 0x660   : > { %v1301_v29 = vld [vmem:[#allocation5] sm:$0xf] }
 0x661   : > { %1919 = vmatmul.mubr.msk.bf16.vlgmr.msra.gmra.mxu1 %vm584_vm0, %v1301_v29 }
 0x662   : > { %1946 = vmatprep.mubr.msk.bf16.mxu1 %vm2307_vm1, %v2306_v8  ;;  %1931 = vmatpush3.bf16.msra.mxu1 %v2067_v56 }
 0x663   : > { %1932 = vmatprep.subr.bf16.mxu1 %v2306_v8 }
 0x666   : > { %1933 = vmatpush3.bf16.msra.mxu1 %v2068_v57 }
 0x667   : > { %1934 = vmatprep.subr.bf16.mxu1 %v2306_v8 }
 0x66a   : > { %1935 = vmatpush3.bf16.msra.mxu1 %v2069_v58 }
 0x66b   : > { %1936 = vmatprep.subr.bf16.mxu1 %v2306_v8 }
 0x66e   : > { %1937 = vmatpush3.bf16.msra.mxu1 %v2070_v59 }
 0x66f   : > { %1938 = vmatprep.subr.bf16.mxu1 %v2306_v8 }
 0x672   : > { %1939 = vmatpush3.bf16.msra.mxu1 %v2071_v60 }
 0x673   : > { %1940 = vmatprep.subr.bf16.mxu1 %v2306_v8 }
 0x676   : > { %1941 = vmatpush3.bf16.msra.mxu1 %v2072_v61 }
 0x677   : > { %1942 = vmatprep.subr.bf16.mxu1 %v2306_v8 }
 0x67a   : > { %1943 = vmatpush3.bf16.msra.mxu1 %v2073_v62 }
 0x67b   : > { %1944 = vmatprep.subr.bf16.mxu1 %v2306_v8 }
 0x67e   : > { %1945 = vmatpush3.bf16.msra.mxu1 %v2074_v63 }
 0x721   : > { %v1362_v31 = vpop.f32.mrf.mxu1 }
 0x722   : > { %v1363_v33 = vadd.f32 %v1774_v30, %v1362_v31 }
 0x723   : > { %v1920_v34 = vpop.f32.mrf.mxu1 }
 0x724   : > { %v1375_v35 = vmul.f32 %v1778_v32, %v1363_v33 }
 0x725   : > { %v1365_v36 = vpop.f32.mrf.mxu1 }
 0x726   : > { %v2646_v37 = vadd.f32 %v1375_v35, %v2529_v0  ;;  %v2066_v0 = vld [vmem:[%s2756_s11] sm:$0xff]  }
 0x727   : > { %v1921_v38 = vpop.f32.mrf.mxu1  ;;  %1925 = vmatpush3.bf16.msra.mxu0 %v2066_v0 }
 0x728   : > { %v1379_v39 = vsel %vm584_vm0, %v2646_v37, 0.0 }
 0x729   : > { %1380 = vadd.xlane.f32.xlu1 %v1379_v39 }
 0x7b2   : > { %v1381_v40 = vpop.xlane.xlu1 %1380 }
 0x7b3   : > { %v1382_v41 = vmul.f32 0.03125, %v1381_v40 }
 0x7b5   : > { %v1383_v42 = vsub.f32 %v2646_v37, %v1382_v41 }
 0x7b7   : > { %v1384_v43 = vmul.f32 %v1383_v42, %v1383_v42 }
 0x7b9   : > { %v1385_v44 = vsel %vm584_vm0, %v1384_v43, 0.0 }
 0x7ba   : > { %1386 = vadd.xlane.f32.xlu0 %v1385_v44 }
 0x843   : > { %v1387_v46 = vpop.xlane.xlu0 %1386 }
 0x844   : > { %v1388_v47 = vmul.f32 0.03125, %v1387_v46 }
 0x846   : > { %v1389_v48 = vadd.f32 1e-05, %v1388_v47 }
 0x848   : > { %2093 = vrsqrt.f32 %v1389_v48 }
 0x855   : > { %v2094_v49 = vpop.eup %2093 }
 0x856   : > { %v1391_v51 = vmul.f32 %v2094_v49, %v1383_v42 }
 0x858   : > { %v1398_v53 = vmul.f32 %v1779_v50, %v1391_v51 }
 0x85a   : > { %v1405_v54 = vadd.f32 %v1780_v52, %v1398_v53 }
 0x85c   : > { %v1406_v55 = vpack.c.bf16 %v1405_v54, %v1405_v54 }
 0x85e   : > { %1927 = vmatmul.mubr.msk.bf16.vlgmr.msra.gmra.mxu0 %vm584_vm0, %v1406_v55 }
 0x91e   : > { %v1467_v2 = vpop.f32.mrf.mxu0 }
 0x91f   : > { %v1468_v3 = vadd.f32 %v1781_v1, %v1467_v2 }
 0x920   : > { %v1928_v4 = vpop.f32.mrf.mxu0 }
 0x921   : > { %v1474_v5 = vmul.f32 0.044715, %v1468_v3  ;;  %v1473_v8 = vmul.f32 0.5, %v1468_v3 }
 0x922   : > { %v1470_v6 = vpop.f32.mrf.mxu0 }
 0x923   : > { %v1475_v7 = vmul.f32 %v1474_v5, %v1468_v3 }
 0x924   : > { %v1929_v9 = vpop.f32.mrf.mxu0 }
 0x925   : > { %v1476_v10 = vmul.f32 %v1475_v7, %v1468_v3 }
 0x927   : > { %v1477_v11 = vadd.f32 %v1476_v10, %v1468_v3 }
 0x929   : > { %v1478_v12 = vmul.f32 0.7978846, %v1477_v11 }
 0x92b   : > { %2095 = vtanh.f32 %v1478_v12 }
 0x938   : > { %v2096_v13 = vpop.eup %2095 }
 0x939   : > { %v1480_v14 = vadd.f32 1.0, %v2096_v13 }
 0x93b   : > { %v1481_v15 = vmul.f32 %v1480_v14, %v1473_v8 }
 0x93d   : > { %v1482_v16 = vpack.c.bf16 %v1481_v15, %v1481_v15 }
 0x93f   : > { %1947 = vmatmul.mubr.bf16.vlgmr.msra.gmra.mxu1 %v1482_v16 }
 0x9ff   : > { %v1589_v19 = vpop.f32.mrf.mxu1 }
 0xa00   : > { %v1590_v20 = vadd.f32 %v1785_v17, %v1589_v19 }
 0xa01   : > { %v1948_v21 = vpop.f32.mrf.mxu1 }
 0xa02   : > { %v1601_v22 = vmul.f32 %v1794_v18, %v1590_v20 }
 0xa03   : > { %v1592_v23 = vpop.f32.mrf.mxu1 }
 0xa04   : > { %v1602_v24 = vadd.f32 %v1601_v22, %v2646_v37 }
 0xa05   : > { %v1949_v25 = vpop.f32.mrf.mxu1 }
 0xa06   : > { %1603 = vst.msk [vmem:[%s575_s21] sm:$0xff] %vm584_vm0, %v1602_v24 }
 0xa07   : > { %2240 = shalt.err (!%p2237_p0)
}
 0xa08   : > { %s2241_s19 = scalar_lea.hbm %s2709_s2, 128  ;;  %s2245_s17 = scalar_lea.hbm %s2761_s16, 256 }
 0xa09   : > { %p2242_p13 = scmp.ne.s32.totalorder %s2709_s2, %s2241_s19  ;;  %p2246_p9 = scmp.lt.s32.totalorder %s2709_s2, %s2761_s16 }
 0xa0a   : > { %p2247_p12 = scmp.lt.s32.totalorder %s2245_s17, %s2241_s19 }
 0xa0b   : > { %p2243_p1 = pnand %p2242_p13, %p2793_p6 }
 0xa0c   : > { %p2248_p3 = por %p2247_p12, %p2246_p9 }
 0xa0d   : > { %p2244_p2 = pneg %p2243_p1 }
 0xa0f   : > { %p2249_p5 = pnand %p2248_p3, %p2244_p2 }
 0xa11   : > { %2252 = shalt.err (!%p2249_p5)
}
 0xa12   : > { %1970 = dma.vmem_to_hbm [thread:$0]  (%p2793_p6), %s1619_s23, 128, %s2709_s2, %s1605_s28  }
 0xa13 PF: > { %s2794_s20 = sld [smem:[#allocation22_spill]] }
 0xa14   : > { %s2795_s29 = sld [smem:[#allocation20_spill]] }
 0xa15   : > { %s2796_s25 = sld [smem:[#allocation25_spill]] }
 0xa19   : > { %p2002_p10 = scmp.ge.s32.totalorder %s2794_s20, 2 }
 0xa1a   : > { %s1630_s18 = sand.u32 1, %s2795_s29  }
 0xa1b   : > { %p2797_p4 = scmp.ne.s32.totalorder %s2796_s25, 0  ;;  %s1631_s30 = scalar_lea.sflag [#allocation8], %s1630_s18 }
 0xa1d   : > { %p1989_p7 = pnand %p2002_p10, %p2797_p4 }
 0xa1f   : > { %p1990_p8 = pneg %p1989_p7 }
 0xa21   : > { %2282 = dma.done.wait (%p1990_p8), %s1631_s30, 128  }
 0xa22   : > { %2284 = vsyncadd (%p1990_p8), %s1631_s30, 4294967168  ;;  %s2798_s24 = sld [smem:[#allocation23_spill]]  ;;  %s2801_s21 = smov %s2291_s22 }
 0xa23   : > { %s2799_s19 = sld [smem:[#allocation21_spill]] }
 0xa24   : > { %s2800_s23 = sld [smem:[#allocation24_spill]] }
 0xa28   : > { %p29_p11 = scmp.ge.s32.totalorder %s2798_s24, 4  }
 0xa29   : > { %s2802_s22 = smov %s2799_s19 }
 0xa2a   :  { %31 = sbr.rel (!%p29_p11) target bundleno = 9 (0x9), region = 140 }
 0xa2f   :  { %1636 = vsyncpa [#allocation7], 1 }
 0xa30   :  { %1638 = vsyncpa [#allocation7 + $0x1], 1 }
 0xa31   :  { %1639 = vsyncpa [#allocation10], 1 }
 0xa32   :  { %1640 = vsyncpa [#allocation13], 1 }
 0xa33   :  { %1641 = vsyncpa [#allocation8], 1 }
 0xa34   :  { %1643 = vsyncpa [#allocation8 + $0x1], 1 }

</bundles_post_ra>
